<compile_context>
chip_gen: v5e
topology: v5e:2x2
jax: 0.10.0
libtpu: 0.0.40
codegen_flags: <defaults>
</compile_context>

<pallas_src>
import jax
import jax.numpy as jnp
from jax import lax
from jax.experimental import pallas as pl
from jax.experimental.pallas import tpu as pltpu

SEQ = 8
BATCH = 8          # fill the 8 sublanes of an f32 vreg
INPUT = 16
HIDDEN = 32        # 4*HIDDEN = 128 = exactly one lane width
NUM_CLASSES = 2


def _lstm_classifier_kernel(x2d_ref, len_ref,
                            wih0_ref, whh0_ref, b0_ref,
                            w1cat_ref, b1_ref,
                            wfc_ref, bfc_ref,
                            rep_ref, logits_ref):
    H = HIDDEN
    B = BATCH
    G = 4 * H

    # ---- hoisted, non-recurrent layer-0 input projection (one big matmul) ----
    xg0 = (jnp.dot(x2d_ref[...], wih0_ref[...], preferred_element_type=jnp.float32)
           + jnp.broadcast_to(b0_ref[...], (SEQ * B, G)))          # (SEQ*B, 4H)

    # Loop-invariant loads / broadcasts hoisted once.
    whh0 = whh0_ref[...]                                           # (H, 4H)
    w1cat = w1cat_ref[...]                                         # (2H, 4H)
    b1 = jnp.broadcast_to(b1_ref[...], (B, G))                     # (B, 4H)
    lens_b = jnp.broadcast_to(len_ref[...], (B, H))                # (B, H) int32

    def gates_to_hc(gates, c):
        # Whole-vreg transcendentals (4H == 128 lanes): sigmoid/tanh on the full
        # gate vector, then constant-offset lane slices. PyTorch order: i,f,g,o.
        sg = jax.nn.sigmoid(gates)
        th = jnp.tanh(gates)
        i = sg[:, 0:H]
        f = sg[:, H:2 * H]
        g = th[:, 2 * H:3 * H]
        o = sg[:, 3 * H:4 * H]
        c_new = f * c + i * g
        h_new = o * jnp.tanh(c_new)
        return h_new, c_new

    z = jnp.zeros((B, H), jnp.float32)
    h0, c0, h1, c1, acc = z, z, z, z, z

    # Fused two-layer recurrence, fully unrolled (SEQ is static & tiny): the LLO
    # scheduler can overlap layer-0 step t+1 with layer-1 step t.
    for t in range(SEQ):
        # layer 0: only the recurrent matmul remains on the critical path
        g0 = xg0[t * B:(t + 1) * B, :] + jnp.dot(
            h0, whh0, preferred_element_type=jnp.float32)
        h0, c0 = gates_to_hc(g0, c0)

        # layer 1: single fused matmul  [x_t, h_{t-1}] @ [Wih1; Whh1]
        xh = jnp.concatenate([h0, h1], axis=-1)                    # (B, 2H)
        g1 = jnp.dot(xh, w1cat, preferred_element_type=jnp.float32) + b1
        h1, c1 = gates_to_hc(g1, c1)

        # exactly one timestep per batch element satisfies t == length-1
        acc = jnp.where(lens_b == (t + 1), h1, acc)

    rep_ref[...] = acc
    # fc; dropout(p=0.8) is identity in eval mode.
    # TODO(synk): training-mode dropout (random mask + 1/(1-p) scaling) not implemented.
    logits_ref[...] = (jnp.dot(acc, wfc_ref[...], preferred_element_type=jnp.float32)
                       + bfc_ref[...])


def prepare_params(params):
    """One-time weight prep (transpose / concat / reshape) outside the forward path."""
    return dict(
        wih0=jnp.asarray(params["wih0"].T),                                    # (INPUT, 4H)
        whh0=jnp.asarray(params["whh0"].T),                                    # (H, 4H)
        b0=params["b0"].reshape(1, -1),                                        # (1, 4H)
        w1cat=jnp.concatenate([params["wih1"].T, params["whh1"].T], axis=0),   # (2H, 4H)
        b1=params["b1"].reshape(1, -1),                                        # (1, 4H)
        wfc=jnp.asarray(params["wfc"].T),                                      # (H, 2)
        bfc=params["bfc"].reshape(1, -1),                                      # (1, 2)
    )


@jax.jit
def lstm_classifier_forward(x, lengths, prepped):
    vmem = pl.BlockSpec(memory_space=pltpu.MemorySpace.VMEM)
    x2d = x.reshape(SEQ * BATCH, INPUT)              # free row-major reshape in XLA
    rep, logits = pl.pallas_call(
        _lstm_classifier_kernel,
        out_shape=(jax.ShapeDtypeStruct((BATCH, HIDDEN), jnp.float32),
                   jax.ShapeDtypeStruct((BATCH, NUM_CLASSES), jnp.float32)),
        in_specs=[vmem] * 9,
        out_specs=(vmem, vmem),
    )(x2d,
      lengths.reshape(BATCH, 1).astype(jnp.int32),
      prepped["wih0"], prepped["whh0"], prepped["b0"],
      prepped["w1cat"], prepped["b1"],
      prepped["wfc"], prepped["bfc"])
    return rep, logits


def init_params(key):
    k = 1.0 / jnp.sqrt(HIDDEN)
    ks = jax.random.split(key, 10)
    u = lambda kk, shape: jax.random.uniform(kk, shape, jnp.float32, -k, k)
    wih0 = u(ks[0], (4 * HIDDEN, INPUT))
    whh0 = u(ks[1], (4 * HIDDEN, HIDDEN))
    b0 = u(ks[2], (4 * HIDDEN,)) + u(ks[3], (4 * HIDDEN,))    # bias_ih + bias_hh
    wih1 = u(ks[4], (4 * HIDDEN, HIDDEN))
    whh1 = u(ks[5], (4 * HIDDEN, HIDDEN))
    b1 = u(ks[6], (4 * HIDDEN,)) + u(ks[7], (4 * HIDDEN,))
    wfc = u(ks[8], (NUM_CLASSES, HIDDEN))
    bfc = u(ks[9], (NUM_CLASSES,))
    return dict(wih0=wih0, whh0=whh0, b0=b0,
                wih1=wih1, whh1=whh1, b1=b1,
                wfc=wfc, bfc=bfc)


def reference_forward(x, lengths, p):
    """Pure-JAX reference (same semantics as the PyTorch module in eval mode)."""
    H = HIDDEN

    def run_layer(inp, wih, whh, b):
        def step(carry, x_t):
            h, c = carry
            gates = x_t @ wih.T + h @ whh.T + b
            i = jax.nn.sigmoid(gates[:, 0:H])
            f = jax.nn.sigmoid(gates[:, H:2 * H])
            g = jnp.tanh(gates[:, 2 * H:3 * H])
            o = jax.nn.sigmoid(gates[:, 3 * H:4 * H])
            c_new = f * c + i * g
            h_new = o * jnp.tanh(c_new)
            return (h_new, c_new), h_new
        z = jnp.zeros((BATCH, H), jnp.float32)
        _, outs = lax.scan(step, (z, z), inp)
        return outs

    l0 = run_layer(x, p["wih0"], p["whh0"], p["b0"])
    l1 = run_layer(l0, p["wih1"], p["whh1"], p["b1"])
    rep = l1[lengths - 1, jnp.arange(BATCH), :]
    logits = rep @ p["wfc"].T + p["bfc"]
    return rep, logits


if __name__ == "__main__":
    key = jax.random.PRNGKey(0)
    kx, kp = jax.random.split(key)
    x = jax.random.normal(kx, (SEQ, BATCH, INPUT), jnp.float32)
    lengths = jnp.array([8, 5, 3, 6, 1, 7, 2, 4], dtype=jnp.int32)
    params = init_params(kp)
    prepped = prepare_params(params)           # weight prep done once, outside forward

    rep, logits = lstm_classifier_forward(x, lengths, prepped)
    rep = jax.block_until_ready(rep)
    logits = jax.block_until_ready(logits)

    rep_ref, logits_ref = reference_forward(x, lengths, params)
    assert rep.shape == (BATCH, HIDDEN) and logits.shape == (BATCH, NUM_CLASSES)
    assert jnp.allclose(rep, rep_ref, atol=1e-4, rtol=1e-4)
    assert jnp.allclose(logits, logits_ref, atol=1e-4, rtol=1e-4)
    print("KERNEL_OK")
</pallas_src>

<mosaic_0001>
module attributes {stable_mosaic.version = 11 : i64} {
  func.func @_lstm_classifier_kernel(%arg0: memref<64x16xf32, #tpu.memory_space<vmem>>, %arg1: memref<8x1xi32, #tpu.memory_space<vmem>>, %arg2: memref<16x128xf32, #tpu.memory_space<vmem>>, %arg3: memref<32x128xf32, #tpu.memory_space<vmem>>, %arg4: memref<1x128xf32, #tpu.memory_space<vmem>>, %arg5: memref<64x128xf32, #tpu.memory_space<vmem>>, %arg6: memref<1x128xf32, #tpu.memory_space<vmem>>, %arg7: memref<32x2xf32, #tpu.memory_space<vmem>>, %arg8: memref<1x2xf32, #tpu.memory_space<vmem>>, %arg9: memref<8x32xf32, #tpu.memory_space<vmem>>, %arg10: memref<8x2xf32, #tpu.memory_space<vmem>>) attributes {dimension_semantics = [], scalar_prefetch = 0 : i64, scratch_operands = 0 : i64, tpu.core_type = #tpu.core_type<tc>} {
    %c0 = arith.constant 0 : index
    %c0_0 = arith.constant 0 : index
    %0 = vector.load %arg0[%c0, %c0_0] : memref<64x16xf32, #tpu.memory_space<vmem>>, vector<64x16xf32>
    %c0_1 = arith.constant 0 : index
    %c0_2 = arith.constant 0 : index
    %1 = vector.load %arg2[%c0_1, %c0_2] : memref<16x128xf32, #tpu.memory_space<vmem>>, vector<16x128xf32>
    %cst = arith.constant dense<0.000000e+00> : vector<64x128xf32>
    %2 = tpu.matmul %0, %1, %cst {dimension_numbers = #tpu.dot_dimension_numbers<[1], [0], [0], [1], [0, 0, 1, 1], [], []>} : vector<64x16xf32>, vector<16x128xf32>, vector<64x128xf32> -> vector<64x128xf32>
    %c0_3 = arith.constant 0 : index
    %c0_4 = arith.constant 0 : index
    %3 = vector.load %arg4[%c0_3, %c0_4] : memref<1x128xf32, #tpu.memory_space<vmem>>, vector<1x128xf32>
    %4 = vector.shape_cast %3 : vector<1x128xf32> to vector<1x128xf32>
    %5 = vector.broadcast %4 : vector<1x128xf32> to vector<64x128xf32>
    %6 = arith.addf %2, %5 : vector<64x128xf32>
    %c0_5 = arith.constant 0 : index
    %c0_6 = arith.constant 0 : index
    %7 = vector.load %arg3[%c0_5, %c0_6] : memref<32x128xf32, #tpu.memory_space<vmem>>, vector<32x128xf32>
    %c0_7 = arith.constant 0 : index
    %c0_8 = arith.constant 0 : index
    %8 = vector.load %arg5[%c0_7, %c0_8] : memref<64x128xf32, #tpu.memory_space<vmem>>, vector<64x128xf32>
    %c0_9 = arith.constant 0 : index
    %c0_10 = arith.constant 0 : index
    %9 = vector.load %arg6[%c0_9, %c0_10] : memref<1x128xf32, #tpu.memory_space<vmem>>, vector<1x128xf32>
    %10 = vector.shape_cast %9 : vector<1x128xf32> to vector<1x128xf32>
    %11 = vector.broadcast %10 : vector<1x128xf32> to vector<8x128xf32>
    %c0_11 = arith.constant 0 : index
    %c0_12 = arith.constant 0 : index
    %12 = vector.load %arg1[%c0_11, %c0_12] : memref<8x1xi32, #tpu.memory_space<vmem>>, vector<8x1xi32>
    %13 = vector.shape_cast %12 : vector<8x1xi32> to vector<8x1xi32>
    %14 = vector.broadcast %13 : vector<8x1xi32> to vector<8x32xi32>
    %cst_13 = arith.constant 0.000000e+00 : f32
    %15 = vector.broadcast %cst_13 : f32 to vector<8x32xf32>
    %16 = vector.extract_strided_slice %6 {offsets = [0, 0], sizes = [8, 128], strides = [1, 1]} : vector<64x128xf32> to vector<8x128xf32>
    %cst_14 = arith.constant dense<0.000000e+00> : vector<8x128xf32>
    %17 = tpu.matmul %15, %7, %cst_14 {dimension_numbers = #tpu.dot_dimension_numbers<[1], [0], [0], [1], [0, 0, 1, 1], [], []>} : vector<8x32xf32>, vector<32x128xf32>, vector<8x128xf32> -> vector<8x128xf32>
    %18 = arith.addf %16, %17 : vector<8x128xf32>
    %19 = arith.negf %18 : vector<8x128xf32>
    %20 = math.exp %19 : vector<8x128xf32>
    %cst_15 = arith.constant 1.000000e+00 : f32
    %21 = vector.broadcast %cst_15 : f32 to vector<8x128xf32>
    %22 = arith.addf %21, %20 : vector<8x128xf32>
    %23 = arith.divf %21, %22 : vector<8x128xf32>
    %24 = math.tanh %18 : vector<8x128xf32>
    %25 = vector.extract_strided_slice %23 {offsets = [0, 0], sizes = [8, 32], strides = [1, 1]} : vector<8x128xf32> to vector<8x32xf32>
    %26 = vector.extract_strided_slice %23 {offsets = [0, 32], sizes = [8, 32], strides = [1, 1]} : vector<8x128xf32> to vector<8x32xf32>
    %27 = vector.extract_strided_slice %24 {offsets = [0, 64], sizes = [8, 32], strides = [1, 1]} : vector<8x128xf32> to vector<8x32xf32>
    %28 = vector.extract_strided_slice %23 {offsets = [0, 96], sizes = [8, 32], strides = [1, 1]} : vector<8x128xf32> to vector<8x32xf32>
    %29 = arith.mulf %26, %15 : vector<8x32xf32>
    %30 = arith.mulf %25, %27 : vector<8x32xf32>
    %31 = arith.addf %29, %30 : vector<8x32xf32>
    %32 = math.tanh %31 : vector<8x32xf32>
    %33 = arith.mulf %28, %32 : vector<8x32xf32>
    %34 = tpu.concatenate %33, %15 in 1 : vector<8x32xf32>, vector<8x32xf32> -> vector<8x64xf32>
    %cst_16 = arith.constant dense<0.000000e+00> : vector<8x128xf32>
    %35 = tpu.matmul %34, %8, %cst_16 {dimension_numbers = #tpu.dot_dimension_numbers<[1], [0], [0], [1], [0, 0, 1, 1], [], []>} : vector<8x64xf32>, vector<64x128xf32>, vector<8x128xf32> -> vector<8x128xf32>
    %36 = arith.addf %35, %11 : vector<8x128xf32>
    %37 = arith.negf %36 : vector<8x128xf32>
    %38 = math.exp %37 : vector<8x128xf32>
    %cst_17 = arith.constant 1.000000e+00 : f32
    %39 = vector.broadcast %cst_17 : f32 to vector<8x128xf32>
    %40 = arith.addf %39, %38 : vector<8x128xf32>
    %41 = arith.divf %39, %40 : vector<8x128xf32>
    %42 = math.tanh %36 : vector<8x128xf32>
    %43 = vector.extract_strided_slice %41 {offsets = [0, 0], sizes = [8, 32], strides = [1, 1]} : vector<8x128xf32> to vector<8x32xf32>
    %44 = vector.extract_strided_slice %41 {offsets = [0, 32], sizes = [8, 32], strides = [1, 1]} : vector<8x128xf32> to vector<8x32xf32>
    %45 = vector.extract_strided_slice %42 {offsets = [0, 64], sizes = [8, 32], strides = [1, 1]} : vector<8x128xf32> to vector<8x32xf32>
    %46 = vector.extract_strided_slice %41 {offsets = [0, 96], sizes = [8, 32], strides = [1, 1]} : vector<8x128xf32> to vector<8x32xf32>
    %47 = arith.mulf %44, %15 : vector<8x32xf32>
    %48 = arith.mulf %43, %45 : vector<8x32xf32>
    %49 = arith.addf %47, %48 : vector<8x32xf32>
    %50 = math.tanh %49 : vector<8x32xf32>
    %51 = arith.mulf %46, %50 : vector<8x32xf32>
    %c1_i32 = arith.constant 1 : i32
    %52 = vector.broadcast %c1_i32 : i32 to vector<8x32xi32>
    %53 = arith.cmpi eq, %14, %52 : vector<8x32xi32>
    %54 = arith.select %53, %51, %15 : vector<8x32xi1>, vector<8x32xf32>
    %55 = vector.extract_strided_slice %6 {offsets = [8, 0], sizes = [8, 128], strides = [1, 1]} : vector<64x128xf32> to vector<8x128xf32>
    %cst_18 = arith.constant dense<0.000000e+00> : vector<8x128xf32>
    %56 = tpu.matmul %33, %7, %cst_18 {dimension_numbers = #tpu.dot_dimension_numbers<[1], [0], [0], [1], [0, 0, 1, 1], [], []>} : vector<8x32xf32>, vector<32x128xf32>, vector<8x128xf32> -> vector<8x128xf32>
    %57 = arith.addf %55, %56 : vector<8x128xf32>
    %58 = arith.negf %57 : vector<8x128xf32>
    %59 = math.exp %58 : vector<8x128xf32>
    %cst_19 = arith.constant 1.000000e+00 : f32
    %60 = vector.broadcast %cst_19 : f32 to vector<8x128xf32>
    %61 = arith.addf %60, %59 : vector<8x128xf32>
    %62 = arith.divf %60, %61 : vector<8x128xf32>
    %63 = math.tanh %57 : vector<8x128xf32>
    %64 = vector.extract_strided_slice %62 {offsets = [0, 0], sizes = [8, 32], strides = [1, 1]} : vector<8x128xf32> to vector<8x32xf32>
    %65 = vector.extract_strided_slice %62 {offsets = [0, 32], sizes = [8, 32], strides = [1, 1]} : vector<8x128xf32> to vector<8x32xf32>
    %66 = vector.extract_strided_slice %63 {offsets = [0, 64], sizes = [8, 32], strides = [1, 1]} : vector<8x128xf32> to vector<8x32xf32>
    %67 = vector.extract_strided_slice %62 {offsets = [0, 96], sizes = [8, 32], strides = [1, 1]} : vector<8x128xf32> to vector<8x32xf32>
    %68 = arith.mulf %65, %31 : vector<8x32xf32>
    %69 = arith.mulf %64, %66 : vector<8x32xf32>
    %70 = arith.addf %68, %69 : vector<8x32xf32>
    %71 = math.tanh %70 : vector<8x32xf32>
    %72 = arith.mulf %67, %71 : vector<8x32xf32>
    %73 = tpu.concatenate %72, %51 in 1 : vector<8x32xf32>, vector<8x32xf32> -> vector<8x64xf32>
    %cst_20 = arith.constant dense<0.000000e+00> : vector<8x128xf32>
    %74 = tpu.matmul %73, %8, %cst_20 {dimension_numbers = #tpu.dot_dimension_numbers<[1], [0], [0], [1], [0, 0, 1, 1], [], []>} : vector<8x64xf32>, vector<64x128xf32>, vector<8x128xf32> -> vector<8x128xf32>
    %75 = arith.addf %74, %11 : vector<8x128xf32>
    %76 = arith.negf %75 : vector<8x128xf32>
    %77 = math.exp %76 : vector<8x128xf32>
    %cst_21 = arith.constant 1.000000e+00 : f32
    %78 = vector.broadcast %cst_21 : f32 to vector<8x128xf32>
    %79 = arith.addf %78, %77 : vector<8x128xf32>
    %80 = arith.divf %78, %79 : vector<8x128xf32>
    %81 = math.tanh %75 : vector<8x128xf32>
    %82 = vector.extract_strided_slice %80 {offsets = [0, 0], sizes = [8, 32], strides = [1, 1]} : vector<8x128xf32> to vector<8x32xf32>
    %83 = vector.extract_strided_slice %80 {offsets = [0, 32], sizes = [8, 32], strides = [1, 1]} : vector<8x128xf32> to vector<8x32xf32>
    %84 = vector.extract_strided_slice %81 {offsets = [0, 64], sizes = [8, 32], strides = [1, 1]} : vector<8x128xf32> to vector<8x32xf32>
    %85 = vector.extract_strided_slice %80 {offsets = [0, 96], sizes = [8, 32], strides = [1, 1]} : vector<8x128xf32> to vector<8x32xf32>
    %86 = arith.mulf %83, %49 : vector<8x32xf32>
    %87 = arith.mulf %82, %84 : vector<8x32xf32>
    %88 = arith.addf %86, %87 : vector<8x32xf32>
    %89 = math.tanh %88 : vector<8x32xf32>
    %90 = arith.mulf %85, %89 : vector<8x32xf32>
    %c2_i32 = arith.constant 2 : i32
    %91 = vector.broadcast %c2_i32 : i32 to vector<8x32xi32>
    %92 = arith.cmpi eq, %14, %91 : vector<8x32xi32>
    %93 = arith.select %92, %90, %54 : vector<8x32xi1>, vector<8x32xf32>
    %94 = vector.extract_strided_slice %6 {offsets = [16, 0], sizes = [8, 128], strides = [1, 1]} : vector<64x128xf32> to vector<8x128xf32>
    %cst_22 = arith.constant dense<0.000000e+00> : vector<8x128xf32>
    %95 = tpu.matmul %72, %7, %cst_22 {dimension_numbers = #tpu.dot_dimension_numbers<[1], [0], [0], [1], [0, 0, 1, 1], [], []>} : vector<8x32xf32>, vector<32x128xf32>, vector<8x128xf32> -> vector<8x128xf32>
    %96 = arith.addf %94, %95 : vector<8x128xf32>
    %97 = arith.negf %96 : vector<8x128xf32>
    %98 = math.exp %97 : vector<8x128xf32>
    %cst_23 = arith.constant 1.000000e+00 : f32
    %99 = vector.broadcast %cst_23 : f32 to vector<8x128xf32>
    %100 = arith.addf %99, %98 : vector<8x128xf32>
    %101 = arith.divf %99, %100 : vector<8x128xf32>
    %102 = math.tanh %96 : vector<8x128xf32>
    %103 = vector.extract_strided_slice %101 {offsets = [0, 0], sizes = [8, 32], strides = [1, 1]} : vector<8x128xf32> to vector<8x32xf32>
    %104 = vector.extract_strided_slice %101 {offsets = [0, 32], sizes = [8, 32], strides = [1, 1]} : vector<8x128xf32> to vector<8x32xf32>
    %105 = vector.extract_strided_slice %102 {offsets = [0, 64], sizes = [8, 32], strides = [1, 1]} : vector<8x128xf32> to vector<8x32xf32>
    %106 = vector.extract_strided_slice %101 {offsets = [0, 96], sizes = [8, 32], strides = [1, 1]} : vector<8x128xf32> to vector<8x32xf32>
    %107 = arith.mulf %104, %70 : vector<8x32xf32>
    %108 = arith.mulf %103, %105 : vector<8x32xf32>
    %109 = arith.addf %107, %108 : vector<8x32xf32>
    %110 = math.tanh %109 : vector<8x32xf32>
    %111 = arith.mulf %106, %110 : vector<8x32xf32>
    %112 = tpu.concatenate %111, %90 in 1 : vector<8x32xf32>, vector<8x32xf32> -> vector<8x64xf32>
    %cst_24 = arith.constant dense<0.000000e+00> : vector<8x128xf32>
    %113 = tpu.matmul %112, %8, %cst_24 {dimension_numbers = #tpu.dot_dimension_numbers<[1], [0], [0], [1], [0, 0, 1, 1], [], []>} : vector<8x64xf32>, vector<64x128xf32>, vector<8x128xf32> -> vector<8x128xf32>
    %114 = arith.addf %113, %11 : vector<8x128xf32>
    %115 = arith.negf %114 : vector<8x128xf32>
    %116 = math.exp %115 : vector<8x128xf32>
    %cst_25 = arith.constant 1.000000e+00 : f32
    %117 = vector.broadcast %cst_25 : f32 to vector<8x128xf32>
    %118 = arith.addf %117, %116 : vector<8x128xf32>
    %119 = arith.divf %117, %118 : vector<8x128xf32>
    %120 = math.tanh %114 : vector<8x128xf32>
    %121 = vector.extract_strided_slice %119 {offsets = [0, 0], sizes = [8, 32], strides = [1, 1]} : vector<8x128xf32> to vector<8x32xf32>
    %122 = vector.extract_strided_slice %119 {offsets = [0, 32], sizes = [8, 32], strides = [1, 1]} : vector<8x128xf32> to vector<8x32xf32>
    %123 = vector.extract_strided_slice %120 {offsets = [0, 64], sizes = [8, 32], strides = [1, 1]} : vector<8x128xf32> to vector<8x32xf32>
    %124 = vector.extract_strided_slice %119 {offsets = [0, 96], sizes = [8, 32], strides = [1, 1]} : vector<8x128xf32> to vector<8x32xf32>
    %125 = arith.mulf %122, %88 : vector<8x32xf32>
    %126 = arith.mulf %121, %123 : vector<8x32xf32>
    %127 = arith.addf %125, %126 : vector<8x32xf32>
    %128 = math.tanh %127 : vector<8x32xf32>
    %129 = arith.mulf %124, %128 : vector<8x32xf32>
    %c3_i32 = arith.constant 3 : i32
    %130 = vector.broadcast %c3_i32 : i32 to vector<8x32xi32>
    %131 = arith.cmpi eq, %14, %130 : vector<8x32xi32>
    %132 = arith.select %131, %129, %93 : vector<8x32xi1>, vector<8x32xf32>
    %133 = vector.extract_strided_slice %6 {offsets = [24, 0], sizes = [8, 128], strides = [1, 1]} : vector<64x128xf32> to vector<8x128xf32>
    %cst_26 = arith.constant dense<0.000000e+00> : vector<8x128xf32>
    %134 = tpu.matmul %111, %7, %cst_26 {dimension_numbers = #tpu.dot_dimension_numbers<[1], [0], [0], [1], [0, 0, 1, 1], [], []>} : vector<8x32xf32>, vector<32x128xf32>, vector<8x128xf32> -> vector<8x128xf32>
    %135 = arith.addf %133, %134 : vector<8x128xf32>
    %136 = arith.negf %135 : vector<8x128xf32>
    %137 = math.exp %136 : vector<8x128xf32>
    %cst_27 = arith.constant 1.000000e+00 : f32
    %138 = vector.broadcast %cst_27 : f32 to vector<8x128xf32>
    %139 = arith.addf %138, %137 : vector<8x128xf32>
    %140 = arith.divf %138, %139 : vector<8x128xf32>
    %141 = math.tanh %135 : vector<8x128xf32>
    %142 = vector.extract_strided_slice %140 {offsets = [0, 0], sizes = [8, 32], strides = [1, 1]} : vector<8x128xf32> to vector<8x32xf32>
    %143 = vector.extract_strided_slice %140 {offsets = [0, 32], sizes = [8, 32], strides = [1, 1]} : vector<8x128xf32> to vector<8x32xf32>
    %144 = vector.extract_strided_slice %141 {offsets = [0, 64], sizes = [8, 32], strides = [1, 1]} : vector<8x128xf32> to vector<8x32xf32>
    %145 = vector.extract_strided_slice %140 {offsets = [0, 96], sizes = [8, 32], strides = [1, 1]} : vector<8x128xf32> to vector<8x32xf32>
    %146 = arith.mulf %143, %109 : vector<8x32xf32>
    %147 = arith.mulf %142, %144 : vector<8x32xf32>
    %148 = arith.addf %146, %147 : vector<8x32xf32>
    %149 = math.tanh %148 : vector<8x32xf32>
    %150 = arith.mulf %145, %149 : vector<8x32xf32>
    %151 = tpu.concatenate %150, %129 in 1 : vector<8x32xf32>, vector<8x32xf32> -> vector<8x64xf32>
    %cst_28 = arith.constant dense<0.000000e+00> : vector<8x128xf32>
    %152 = tpu.matmul %151, %8, %cst_28 {dimension_numbers = #tpu.dot_dimension_numbers<[1], [0], [0], [1], [0, 0, 1, 1], [], []>} : vector<8x64xf32>, vector<64x128xf32>, vector<8x128xf32> -> vector<8x128xf32>
    %153 = arith.addf %152, %11 : vector<8x128xf32>
    %154 = arith.negf %153 : vector<8x128xf32>
    %155 = math.exp %154 : vector<8x128xf32>
    %cst_29 = arith.constant 1.000000e+00 : f32
    %156 = vector.broadcast %cst_29 : f32 to vector<8x128xf32>
    %157 = arith.addf %156, %155 : vector<8x128xf32>
    %158 = arith.divf %156, %157 : vector<8x128xf32>
    %159 = math.tanh %153 : vector<8x128xf32>
    %160 = vector.extract_strided_slice %158 {offsets = [0, 0], sizes = [8, 32], strides = [1, 1]} : vector<8x128xf32> to vector<8x32xf32>
    %161 = vector.extract_strided_slice %158 {offsets = [0, 32], sizes = [8, 32], strides = [1, 1]} : vector<8x128xf32> to vector<8x32xf32>
    %162 = vector.extract_strided_slice %159 {offsets = [0, 64], sizes = [8, 32], strides = [1, 1]} : vector<8x128xf32> to vector<8x32xf32>
    %163 = vector.extract_strided_slice %158 {offsets = [0, 96], sizes = [8, 32], strides = [1, 1]} : vector<8x128xf32> to vector<8x32xf32>
    %164 = arith.mulf %161, %127 : vector<8x32xf32>
    %165 = arith.mulf %160, %162 : vector<8x32xf32>
    %166 = arith.addf %164, %165 : vector<8x32xf32>
    %167 = math.tanh %166 : vector<8x32xf32>
    %168 = arith.mulf %163, %167 : vector<8x32xf32>
    %c4_i32 = arith.constant 4 : i32
    %169 = vector.broadcast %c4_i32 : i32 to vector<8x32xi32>
    %170 = arith.cmpi eq, %14, %169 : vector<8x32xi32>
    %171 = arith.select %170, %168, %132 : vector<8x32xi1>, vector<8x32xf32>
    %172 = vector.extract_strided_slice %6 {offsets = [32, 0], sizes = [8, 128], strides = [1, 1]} : vector<64x128xf32> to vector<8x128xf32>
    %cst_30 = arith.constant dense<0.000000e+00> : vector<8x128xf32>
    %173 = tpu.matmul %150, %7, %cst_30 {dimension_numbers = #tpu.dot_dimension_numbers<[1], [0], [0], [1], [0, 0, 1, 1], [], []>} : vector<8x32xf32>, vector<32x128xf32>, vector<8x128xf32> -> vector<8x128xf32>
    %174 = arith.addf %172, %173 : vector<8x128xf32>
    %175 = arith.negf %174 : vector<8x128xf32>
    %176 = math.exp %175 : vector<8x128xf32>
    %cst_31 = arith.constant 1.000000e+00 : f32
    %177 = vector.broadcast %cst_31 : f32 to vector<8x128xf32>
    %178 = arith.addf %177, %176 : vector<8x128xf32>
    %179 = arith.divf %177, %178 : vector<8x128xf32>
    %180 = math.tanh %174 : vector<8x128xf32>
    %181 = vector.extract_strided_slice %179 {offsets = [0, 0], sizes = [8, 32], strides = [1, 1]} : vector<8x128xf32> to vector<8x32xf32>
    %182 = vector.extract_strided_slice %179 {offsets = [0, 32], sizes = [8, 32], strides = [1, 1]} : vector<8x128xf32> to vector<8x32xf32>
    %183 = vector.extract_strided_slice %180 {offsets = [0, 64], sizes = [8, 32], strides = [1, 1]} : vector<8x128xf32> to vector<8x32xf32>
    %184 = vector.extract_strided_slice %179 {offsets = [0, 96], sizes = [8, 32], strides = [1, 1]} : vector<8x128xf32> to vector<8x32xf32>
    %185 = arith.mulf %182, %148 : vector<8x32xf32>
    %186 = arith.mulf %181, %183 : vector<8x32xf32>
    %187 = arith.addf %185, %186 : vector<8x32xf32>
    %188 = math.tanh %187 : vector<8x32xf32>
    %189 = arith.mulf %184, %188 : vector<8x32xf32>
    %190 = tpu.concatenate %189, %168 in 1 : vector<8x32xf32>, vector<8x32xf32> -> vector<8x64xf32>
    %cst_32 = arith.constant dense<0.000000e+00> : vector<8x128xf32>
    %191 = tpu.matmul %190, %8, %cst_32 {dimension_numbers = #tpu.dot_dimension_numbers<[1], [0], [0], [1], [0, 0, 1, 1], [], []>} : vector<8x64xf32>, vector<64x128xf32>, vector<8x128xf32> -> vector<8x128xf32>
    %192 = arith.addf %191, %11 : vector<8x128xf32>
    %193 = arith.negf %192 : vector<8x128xf32>
    %194 = math.exp %193 : vector<8x128xf32>
    %cst_33 = arith.constant 1.000000e+00 : f32
    %195 = vector.broadcast %cst_33 : f32 to vector<8x128xf32>
    %196 = arith.addf %195, %194 : vector<8x128xf32>
    %197 = arith.divf %195, %196 : vector<8x128xf32>
    %198 = math.tanh %192 : vector<8x128xf32>
    %199 = vector.extract_strided_slice %197 {offsets = [0, 0], sizes = [8, 32], strides = [1, 1]} : vector<8x128xf32> to vector<8x32xf32>
    %200 = vector.extract_strided_slice %197 {offsets = [0, 32], sizes = [8, 32], strides = [1, 1]} : vector<8x128xf32> to vector<8x32xf32>
    %201 = vector.extract_strided_slice %198 {offsets = [0, 64], sizes = [8, 32], strides = [1, 1]} : vector<8x128xf32> to vector<8x32xf32>
    %202 = vector.extract_strided_slice %197 {offsets = [0, 96], sizes = [8, 32], strides = [1, 1]} : vector<8x128xf32> to vector<8x32xf32>
    %203 = arith.mulf %200, %166 : vector<8x32xf32>
    %204 = arith.mulf %199, %201 : vector<8x32xf32>
    %205 = arith.addf %203, %204 : vector<8x32xf32>
    %206 = math.tanh %205 : vector<8x32xf32>
    %207 = arith.mulf %202, %206 : vector<8x32xf32>
    %c5_i32 = arith.constant 5 : i32
    %208 = vector.broadcast %c5_i32 : i32 to vector<8x32xi32>
    %209 = arith.cmpi eq, %14, %208 : vector<8x32xi32>
    %210 = arith.select %209, %207, %171 : vector<8x32xi1>, vector<8x32xf32>
    %211 = vector.extract_strided_slice %6 {offsets = [40, 0], sizes = [8, 128], strides = [1, 1]} : vector<64x128xf32> to vector<8x128xf32>
    %cst_34 = arith.constant dense<0.000000e+00> : vector<8x128xf32>
    %212 = tpu.matmul %189, %7, %cst_34 {dimension_numbers = #tpu.dot_dimension_numbers<[1], [0], [0], [1], [0, 0, 1, 1], [], []>} : vector<8x32xf32>, vector<32x128xf32>, vector<8x128xf32> -> vector<8x128xf32>
    %213 = arith.addf %211, %212 : vector<8x128xf32>
    %214 = arith.negf %213 : vector<8x128xf32>
    %215 = math.exp %214 : vector<8x128xf32>
    %cst_35 = arith.constant 1.000000e+00 : f32
    %216 = vector.broadcast %cst_35 : f32 to vector<8x128xf32>
    %217 = arith.addf %216, %215 : vector<8x128xf32>
    %218 = arith.divf %216, %217 : vector<8x128xf32>
    %219 = math.tanh %213 : vector<8x128xf32>
    %220 = vector.extract_strided_slice %218 {offsets = [0, 0], sizes = [8, 32], strides = [1, 1]} : vector<8x128xf32> to vector<8x32xf32>
    %221 = vector.extract_strided_slice %218 {offsets = [0, 32], sizes = [8, 32], strides = [1, 1]} : vector<8x128xf32> to vector<8x32xf32>
    %222 = vector.extract_strided_slice %219 {offsets = [0, 64], sizes = [8, 32], strides = [1, 1]} : vector<8x128xf32> to vector<8x32xf32>
    %223 = vector.extract_strided_slice %218 {offsets = [0, 96], sizes = [8, 32], strides = [1, 1]} : vector<8x128xf32> to vector<8x32xf32>
    %224 = arith.mulf %221, %187 : vector<8x32xf32>
    %225 = arith.mulf %220, %222 : vector<8x32xf32>
    %226 = arith.addf %224, %225 : vector<8x32xf32>
    %227 = math.tanh %226 : vector<8x32xf32>
    %228 = arith.mulf %223, %227 : vector<8x32xf32>
    %229 = tpu.concatenate %228, %207 in 1 : vector<8x32xf32>, vector<8x32xf32> -> vector<8x64xf32>
    %cst_36 = arith.constant dense<0.000000e+00> : vector<8x128xf32>
    %230 = tpu.matmul %229, %8, %cst_36 {dimension_numbers = #tpu.dot_dimension_numbers<[1], [0], [0], [1], [0, 0, 1, 1], [], []>} : vector<8x64xf32>, vector<64x128xf32>, vector<8x128xf32> -> vector<8x128xf32>
    %231 = arith.addf %230, %11 : vector<8x128xf32>
    %232 = arith.negf %231 : vector<8x128xf32>
    %233 = math.exp %232 : vector<8x128xf32>
    %cst_37 = arith.constant 1.000000e+00 : f32
    %234 = vector.broadcast %cst_37 : f32 to vector<8x128xf32>
    %235 = arith.addf %234, %233 : vector<8x128xf32>
    %236 = arith.divf %234, %235 : vector<8x128xf32>
    %237 = math.tanh %231 : vector<8x128xf32>
    %238 = vector.extract_strided_slice %236 {offsets = [0, 0], sizes = [8, 32], strides = [1, 1]} : vector<8x128xf32> to vector<8x32xf32>
    %239 = vector.extract_strided_slice %236 {offsets = [0, 32], sizes = [8, 32], strides = [1, 1]} : vector<8x128xf32> to vector<8x32xf32>
    %240 = vector.extract_strided_slice %237 {offsets = [0, 64], sizes = [8, 32], strides = [1, 1]} : vector<8x128xf32> to vector<8x32xf32>
    %241 = vector.extract_strided_slice %236 {offsets = [0, 96], sizes = [8, 32], strides = [1, 1]} : vector<8x128xf32> to vector<8x32xf32>
    %242 = arith.mulf %239, %205 : vector<8x32xf32>
    %243 = arith.mulf %238, %240 : vector<8x32xf32>
    %244 = arith.addf %242, %243 : vector<8x32xf32>
    %245 = math.tanh %244 : vector<8x32xf32>
    %246 = arith.mulf %241, %245 : vector<8x32xf32>
    %c6_i32 = arith.constant 6 : i32
    %247 = vector.broadcast %c6_i32 : i32 to vector<8x32xi32>
    %248 = arith.cmpi eq, %14, %247 : vector<8x32xi32>
    %249 = arith.select %248, %246, %210 : vector<8x32xi1>, vector<8x32xf32>
    %250 = vector.extract_strided_slice %6 {offsets = [48, 0], sizes = [8, 128], strides = [1, 1]} : vector<64x128xf32> to vector<8x128xf32>
    %cst_38 = arith.constant dense<0.000000e+00> : vector<8x128xf32>
    %251 = tpu.matmul %228, %7, %cst_38 {dimension_numbers = #tpu.dot_dimension_numbers<[1], [0], [0], [1], [0, 0, 1, 1], [], []>} : vector<8x32xf32>, vector<32x128xf32>, vector<8x128xf32> -> vector<8x128xf32>
    %252 = arith.addf %250, %251 : vector<8x128xf32>
    %253 = arith.negf %252 : vector<8x128xf32>
    %254 = math.exp %253 : vector<8x128xf32>
    %cst_39 = arith.constant 1.000000e+00 : f32
    %255 = vector.broadcast %cst_39 : f32 to vector<8x128xf32>
    %256 = arith.addf %255, %254 : vector<8x128xf32>
    %257 = arith.divf %255, %256 : vector<8x128xf32>
    %258 = math.tanh %252 : vector<8x128xf32>
    %259 = vector.extract_strided_slice %257 {offsets = [0, 0], sizes = [8, 32], strides = [1, 1]} : vector<8x128xf32> to vector<8x32xf32>
    %260 = vector.extract_strided_slice %257 {offsets = [0, 32], sizes = [8, 32], strides = [1, 1]} : vector<8x128xf32> to vector<8x32xf32>
    %261 = vector.extract_strided_slice %258 {offsets = [0, 64], sizes = [8, 32], strides = [1, 1]} : vector<8x128xf32> to vector<8x32xf32>
    %262 = vector.extract_strided_slice %257 {offsets = [0, 96], sizes = [8, 32], strides = [1, 1]} : vector<8x128xf32> to vector<8x32xf32>
    %263 = arith.mulf %260, %226 : vector<8x32xf32>
    %264 = arith.mulf %259, %261 : vector<8x32xf32>
    %265 = arith.addf %263, %264 : vector<8x32xf32>
    %266 = math.tanh %265 : vector<8x32xf32>
    %267 = arith.mulf %262, %266 : vector<8x32xf32>
    %268 = tpu.concatenate %267, %246 in 1 : vector<8x32xf32>, vector<8x32xf32> -> vector<8x64xf32>
    %cst_40 = arith.constant dense<0.000000e+00> : vector<8x128xf32>
    %269 = tpu.matmul %268, %8, %cst_40 {dimension_numbers = #tpu.dot_dimension_numbers<[1], [0], [0], [1], [0, 0, 1, 1], [], []>} : vector<8x64xf32>, vector<64x128xf32>, vector<8x128xf32> -> vector<8x128xf32>
    %270 = arith.addf %269, %11 : vector<8x128xf32>
    %271 = arith.negf %270 : vector<8x128xf32>
    %272 = math.exp %271 : vector<8x128xf32>
    %cst_41 = arith.constant 1.000000e+00 : f32
    %273 = vector.broadcast %cst_41 : f32 to vector<8x128xf32>
    %274 = arith.addf %273, %272 : vector<8x128xf32>
    %275 = arith.divf %273, %274 : vector<8x128xf32>
    %276 = math.tanh %270 : vector<8x128xf32>
    %277 = vector.extract_strided_slice %275 {offsets = [0, 0], sizes = [8, 32], strides = [1, 1]} : vector<8x128xf32> to vector<8x32xf32>
    %278 = vector.extract_strided_slice %275 {offsets = [0, 32], sizes = [8, 32], strides = [1, 1]} : vector<8x128xf32> to vector<8x32xf32>
    %279 = vector.extract_strided_slice %276 {offsets = [0, 64], sizes = [8, 32], strides = [1, 1]} : vector<8x128xf32> to vector<8x32xf32>
    %280 = vector.extract_strided_slice %275 {offsets = [0, 96], sizes = [8, 32], strides = [1, 1]} : vector<8x128xf32> to vector<8x32xf32>
    %281 = arith.mulf %278, %244 : vector<8x32xf32>
    %282 = arith.mulf %277, %279 : vector<8x32xf32>
    %283 = arith.addf %281, %282 : vector<8x32xf32>
    %284 = math.tanh %283 : vector<8x32xf32>
    %285 = arith.mulf %280, %284 : vector<8x32xf32>
    %c7_i32 = arith.constant 7 : i32
    %286 = vector.broadcast %c7_i32 : i32 to vector<8x32xi32>
    %287 = arith.cmpi eq, %14, %286 : vector<8x32xi32>
    %288 = arith.select %287, %285, %249 : vector<8x32xi1>, vector<8x32xf32>
    %289 = vector.extract_strided_slice %6 {offsets = [56, 0], sizes = [8, 128], strides = [1, 1]} : vector<64x128xf32> to vector<8x128xf32>
    %cst_42 = arith.constant dense<0.000000e+00> : vector<8x128xf32>
    %290 = tpu.matmul %267, %7, %cst_42 {dimension_numbers = #tpu.dot_dimension_numbers<[1], [0], [0], [1], [0, 0, 1, 1], [], []>} : vector<8x32xf32>, vector<32x128xf32>, vector<8x128xf32> -> vector<8x128xf32>
    %291 = arith.addf %289, %290 : vector<8x128xf32>
    %292 = arith.negf %291 : vector<8x128xf32>
    %293 = math.exp %292 : vector<8x128xf32>
    %cst_43 = arith.constant 1.000000e+00 : f32
    %294 = vector.broadcast %cst_43 : f32 to vector<8x128xf32>
    %295 = arith.addf %294, %293 : vector<8x128xf32>
    %296 = arith.divf %294, %295 : vector<8x128xf32>
    %297 = math.tanh %291 : vector<8x128xf32>
    %298 = vector.extract_strided_slice %296 {offsets = [0, 0], sizes = [8, 32], strides = [1, 1]} : vector<8x128xf32> to vector<8x32xf32>
    %299 = vector.extract_strided_slice %296 {offsets = [0, 32], sizes = [8, 32], strides = [1, 1]} : vector<8x128xf32> to vector<8x32xf32>
    %300 = vector.extract_strided_slice %297 {offsets = [0, 64], sizes = [8, 32], strides = [1, 1]} : vector<8x128xf32> to vector<8x32xf32>
    %301 = vector.extract_strided_slice %296 {offsets = [0, 96], sizes = [8, 32], strides = [1, 1]} : vector<8x128xf32> to vector<8x32xf32>
    %302 = arith.mulf %299, %265 : vector<8x32xf32>
    %303 = arith.mulf %298, %300 : vector<8x32xf32>
    %304 = arith.addf %302, %303 : vector<8x32xf32>
    %305 = math.tanh %304 : vector<8x32xf32>
    %306 = arith.mulf %301, %305 : vector<8x32xf32>
    %307 = tpu.concatenate %306, %285 in 1 : vector<8x32xf32>, vector<8x32xf32> -> vector<8x64xf32>
    %cst_44 = arith.constant dense<0.000000e+00> : vector<8x128xf32>
    %308 = tpu.matmul %307, %8, %cst_44 {dimension_numbers = #tpu.dot_dimension_numbers<[1], [0], [0], [1], [0, 0, 1, 1], [], []>} : vector<8x64xf32>, vector<64x128xf32>, vector<8x128xf32> -> vector<8x128xf32>
    %309 = arith.addf %308, %11 : vector<8x128xf32>
    %310 = arith.negf %309 : vector<8x128xf32>
    %311 = math.exp %310 : vector<8x128xf32>
    %cst_45 = arith.constant 1.000000e+00 : f32
    %312 = vector.broadcast %cst_45 : f32 to vector<8x128xf32>
    %313 = arith.addf %312, %311 : vector<8x128xf32>
    %314 = arith.divf %312, %313 : vector<8x128xf32>
    %315 = math.tanh %309 : vector<8x128xf32>
    %316 = vector.extract_strided_slice %314 {offsets = [0, 0], sizes = [8, 32], strides = [1, 1]} : vector<8x128xf32> to vector<8x32xf32>
    %317 = vector.extract_strided_slice %314 {offsets = [0, 32], sizes = [8, 32], strides = [1, 1]} : vector<8x128xf32> to vector<8x32xf32>
    %318 = vector.extract_strided_slice %315 {offsets = [0, 64], sizes = [8, 32], strides = [1, 1]} : vector<8x128xf32> to vector<8x32xf32>
    %319 = vector.extract_strided_slice %314 {offsets = [0, 96], sizes = [8, 32], strides = [1, 1]} : vector<8x128xf32> to vector<8x32xf32>
    %320 = arith.mulf %317, %283 : vector<8x32xf32>
    %321 = arith.mulf %316, %318 : vector<8x32xf32>
    %322 = arith.addf %320, %321 : vector<8x32xf32>
    %323 = math.tanh %322 : vector<8x32xf32>
    %324 = arith.mulf %319, %323 : vector<8x32xf32>
    %c8_i32 = arith.constant 8 : i32
    %325 = vector.broadcast %c8_i32 : i32 to vector<8x32xi32>
    %326 = arith.cmpi eq, %14, %325 : vector<8x32xi32>
    %327 = arith.select %326, %324, %288 : vector<8x32xi1>, vector<8x32xf32>
    %c0_46 = arith.constant 0 : index
    %c0_47 = arith.constant 0 : index
    %328 = vector.load %arg9[%c0_46, %c0_47] : memref<8x32xf32, #tpu.memory_space<vmem>>, vector<8x32xf32>
    tpu.vector_store %arg9[%c0_46, %c0_47], %327 {strides = array<i32>} : memref<8x32xf32, #tpu.memory_space<vmem>>, vector<8x32xf32>,
    %c0_48 = arith.constant 0 : index
    %c0_49 = arith.constant 0 : index
    %329 = vector.load %arg7[%c0_48, %c0_49] : memref<32x2xf32, #tpu.memory_space<vmem>>, vector<32x2xf32>
    %cst_50 = arith.constant dense<0.000000e+00> : vector<8x2xf32>
    %330 = tpu.matmul %327, %329, %cst_50 {dimension_numbers = #tpu.dot_dimension_numbers<[1], [0], [0], [1], [0, 0, 1, 1], [], []>} : vector<8x32xf32>, vector<32x2xf32>, vector<8x2xf32> -> vector<8x2xf32>
    %c0_51 = arith.constant 0 : index
    %c0_52 = arith.constant 0 : index
    %331 = vector.load %arg8[%c0_51, %c0_52] : memref<1x2xf32, #tpu.memory_space<vmem>>, vector<1x2xf32>
    %332 = vector.broadcast %331 : vector<1x2xf32> to vector<8x2xf32>
    %333 = arith.addf %330, %332 : vector<8x2xf32>
    %c0_53 = arith.constant 0 : index
    %c0_54 = arith.constant 0 : index
    %334 = vector.load %arg10[%c0_53, %c0_54] : memref<8x2xf32, #tpu.memory_space<vmem>>, vector<8x2xf32>
    tpu.vector_store %arg10[%c0_53, %c0_54], %333 {strides = array<i32>} : memref<8x2xf32, #tpu.memory_space<vmem>>, vector<8x2xf32>,
    return
  }
}

</mosaic_0001>

<bundles_post_ra>
// kernel: lstm_classifier_forward.1
= control target key start
LH: loop header
LB: loop body
LE: loop exit
PB: predicated region body
PF: predicated region fallthrough
CT: control target
= control target key end

     0   :  { %16 = vsyncpa [#allocation3], 0  ;;  %s2018_s0 = inlined_call_operand.hbm [shape: f32[64,16], index: 0, kind: input, shape index: {}]   ;;  %s2019_s1 = inlined_call_operand.vmem [shape: s32[8,1], index: 1, kind: input, shape index: {}]   ;;  %s2020_s2 = inlined_call_operand.hbm [shape: f32[16,128], index: 2, kind: input, shape index: {}]   ;;  %s2021_s3 = inlined_call_operand.vmem [shape: f32[32,128], index: 3, kind: input, shape index: {}]   ;;  %s2022_s4 = inlined_call_operand.vmem [shape: f32[1,128], index: 4, kind: input, shape index: {}]   ;;  %s2023_s5 = inlined_call_operand.hbm [shape: f32[64,128], index: 5, kind: input, shape index: {}]   ;;  %s2024_s6 = inlined_call_operand.vmem [shape: f32[1,128], index: 6, kind: input, shape index: {}]   ;;  %s2025_s7 = inlined_call_operand.vmem [shape: f32[32,2], index: 7, kind: input, shape index: {}]   ;;  %s2026_s8 = inlined_call_operand.vmem [shape: f32[1,2], index: 8, kind: input, shape index: {}]   ;;  %s2027_s9 = inlined_call_operand.hbm [shape: f32[8,32], index: 9, kind: output, shape index: {0}]   ;;  %s2028_s10 = inlined_call_operand.vmem [shape: f32[8,2], index: 10, kind: output, shape index: {1}]  }
   0x1   :  { %17 = vsyncpa [#allocation6], 0 }
   0x2   :  { %18 = vsyncpa [#allocation4], 0  ;;  %s38_s15 = sshll.u32 %s2020_s2, 4  ;;  %s1575_s16 = smov [#allocation5]   ;;  %s39_s15 = int_to_ptr.hbm [resolvable:$true] %s38_s15 }
   0x3   :  { %s40_s17 = sshll.u32 %s1575_s16, 4  ;;  %s23_s20 = sshll.u32 %s2018_s0, 4  ;;  %s41_s17 = int_to_ptr.vmem [resolvable:$true] %s40_s17  ;;  %s24_s20 = int_to_ptr.hbm [resolvable:$true] %s23_s20 }
   0x4   :  { %s1576_s21 = smov 128   ;;  %s1577_s22 = smov 8  }
   0x5   :  { %46 = dma.hbm_to_vmem [thread:$0]  %s39_s15, 256, %s41_s17, [#allocation6], %s1576_s21, %s1576_s21, %s1577_s22  }
   0x6   :  { %s1578_s23 = smov [#allocation2]   ;;  %s55_s27 = sshll.u32 %s2023_s5, 4  ;;  %s56_s27 = int_to_ptr.hbm [resolvable:$true] %s55_s27 }
   0x7   :  { %s25_s24 = sshll.u32 %s1578_s23, 4  ;;  %s1579_s2 = smov [#allocation7]   ;;  %s26_s24 = int_to_ptr.vmem [resolvable:$true] %s25_s24 }
   0x8   :  { %31 = dma.hbm_to_vmem [thread:$0]  %s24_s20, 1024, %s26_s24, [#allocation3], %s1576_s21, %s1576_s21, %s1577_s22  }
   0x9   :  { %s57_s28 = sshll.u32 %s1579_s2, 4  ;;  %s58_s28 = int_to_ptr.vmem [resolvable:$true] %s57_s28 }
   0xa   :  { %63 = dma.hbm_to_vmem [thread:$0]  %s56_s27, 1024, %s58_s28, [#allocation6], %s1576_s21, %s1576_s21, %s1577_s22  }
   0xb   :  { %1569 = dma.done.wait [#allocation3], 1024  }
   0xc   :  { %1570 = vsyncadd [#allocation3], 4294966272 }
   0xd   :  { %1571 = dma.done.wait [#allocation6], 1280  }
   0xe   :  { %1572 = vsyncadd [#allocation6], 4294966016  ;;  %v1652_v0 = vld [vmem:[%s2021_s3 + $0x18] sm:$0xff]  ;;  %v91_v1 = vld [vmem:[#allocation5 + $0x8] sm:$0xff]  ;;  %vm96_vm0 = vcmask 130048   ;;  %v1580_v7 = vmov 0.0  }
   0xf   :  { %v1657_v2 = vld [vmem:[%s2021_s3 + $0x10] sm:$0xff]  ;;  %198 = vmatpush.msra.mxu1 %v1652_v0  ;;  %135 = vmatpush.msra.mxu0 %v91_v1  ;;  %v90_v3 = vld [vmem:[#allocation5] sm:$0xff]  ;;  %v1663_v5 = vld [vmem:[%s2021_s3 + $0x8] sm:$0xff]  ;;  %s1581_s16 = smov 64   ;;  %s1582_s17 = smov 32   ;;  %vm182_vm5 = vcmask 261120  }
  0x10   :  { %v82_v4 = vld [vmem:[#allocation2] sm:$0xff]  ;;  %326 = vmatpush.msra.mxu3 %v1652_v0  ;;  %v1694_v33 = vld [vmem:[#allocation7 + $0x38] sm:$0xff]  ;;  %v1700_v35 = vld [vmem:[#allocation7 + $0x28] sm:$0xff]  ;;  %vm249_vm6 = vcmask 523264   ;;  %s1273_s5 = sshll.u32 %s2027_s9, 4  ;;  %s1274_s5 = int_to_ptr.hbm [resolvable:$true] %s1273_s5 }
  0x11   :  { %199 = vmatpush.msra.mxu1 %v1657_v2  ;;  %136 = vmatpush.msra.mxu0 %v90_v3  ;;  %v1671_v6 = vld [vmem:[%s2021_s3] sm:$0xff]  ;;  %v1705_v36 = vld [vmem:[#allocation7 + $0x20] sm:$0xff]  ;;  %v1710_v37 = vld [vmem:[#allocation7 + $0x18] sm:$0xff] }
  0x12   :  { %1288 = vmatmul.msk.f32.vlgmr.msra.gmra.mxu0 %vm96_vm0, %v82_v4  ;;  %327 = vmatpush.msra.mxu3 %v1657_v2  ;;  %v1685_v8 = vld [vmem:[%s2022_s4] ss:$0 sm:$0xff]  ;;  %v1720_v39 = vld [vmem:[#allocation7 + $0x8] sm:$0xff]  ;;  %v1730_v42 = vld [vmem:[#allocation7] sm:$0xff] }
  0x13   :  { %200 = vmatpush.msra.mxu1 %v1663_v5  ;;  %v1696_v34 = vld [vmem:[#allocation7 + $0x30] sm:$0xff]  ;;  %261 = vmatpush.msra.mxu2 %v1694_v33  ;;  %v83_v43 = vld [vmem:[#allocation2 + $0x8] sm:$0xff] }
  0x14   :  { %328 = vmatpush.msra.mxu3 %v1663_v5  ;;  %1178 = vmatpush.msrb.mxu0 %v1694_v33  ;;  %v1715_v38 = vld [vmem:[#allocation7 + $0x10] sm:$0xff] }
  0x15   :  { %201 = vmatpush.msra.mxu1 %v1671_v6  ;;  %262 = vmatpush.msra.mxu2 %v1696_v34  ;;  %v1771_v50 = vld [vmem:[%s2024_s6] ss:$0 sm:$0xff] }
  0x16   :  { %202 = vmatmul.f32.vlgmr.msra.gmra.mxu1 %v1580_v7  ;;  %329 = vmatpush.msra.mxu3 %v1671_v6 }
  0x17   :  { %392 = vmatpush.msrb.mxu1 %v1694_v33  ;;  %1179 = vmatpush.msrb.mxu0 %v1696_v34 }
  0x18   :  { %457 = vmatpush.msrb.mxu3 %v1652_v0  ;;  %263 = vmatpush.msra.mxu2 %v1700_v35 }
  0x19   :  { %393 = vmatpush.msrb.mxu1 %v1696_v34  ;;  %1180 = vmatpush.msrb.mxu0 %v1700_v35 }
  0x1a   :  { %458 = vmatpush.msrb.mxu3 %v1657_v2  ;;  %264 = vmatpush.msra.mxu2 %v1705_v36 }
  0x1b   :  { %394 = vmatpush.msrb.mxu1 %v1700_v35  ;;  %1181 = vmatpush.msrb.mxu0 %v1705_v36 }
  0x1c   :  { %459 = vmatpush.msrb.mxu3 %v1663_v5  ;;  %265 = vmatpush.msra.mxu2 %v1710_v37 }
  0x1d   :  { %395 = vmatpush.msrb.mxu1 %v1705_v36  ;;  %1182 = vmatpush.msrb.mxu0 %v1710_v37 }
  0x1e   :  { %460 = vmatpush.msrb.mxu3 %v1671_v6  ;;  %266 = vmatpush.msra.mxu2 %v1715_v38 }
  0x1f   :  { %396 = vmatpush.msrb.mxu1 %v1710_v37  ;;  %1183 = vmatpush.msrb.mxu0 %v1715_v38 }
  0x20   :  { %267 = vmatpush.msra.mxu2 %v1720_v39  ;;  %1289 = vmatmul.msk.f32.gmra.mxu0 %vm96_vm0, %v83_v43 }
  0x21   :  { %397 = vmatpush.msrb.mxu1 %v1715_v38  ;;  %1184 = vmatpush.msrb.mxu0 %v1720_v39 }
  0x22   :  { %268 = vmatpush.msra.mxu2 %v1730_v42 }
  0x23   :  { %398 = vmatpush.msrb.mxu1 %v1720_v39  ;;  %1185 = vmatpush.msrb.mxu0 %v1730_v42 }
  0x24   :  { %523 = vmatpush.msrb.mxu2 %v1694_v33 }
  0x25   :  { %399 = vmatpush.msrb.mxu1 %v1730_v42 }
  0x26   :  { %524 = vmatpush.msrb.mxu2 %v1696_v34 }
  0x27   :  { %654 = vmatpush.msra.mxu1 %v1694_v33 }
  0x28   :  { %525 = vmatpush.msrb.mxu2 %v1700_v35 }
  0x29   :  { %655 = vmatpush.msra.mxu1 %v1696_v34 }
  0x2a   :  { %526 = vmatpush.msrb.mxu2 %v1705_v36 }
  0x2b   :  { %656 = vmatpush.msra.mxu1 %v1700_v35 }
  0x2c   :  { %527 = vmatpush.msrb.mxu2 %v1710_v37 }
  0x2d   :  { %657 = vmatpush.msra.mxu1 %v1705_v36 }
  0x2e   :  { %528 = vmatpush.msrb.mxu2 %v1715_v38 }
  0x2f   :  { %658 = vmatpush.msra.mxu1 %v1710_v37 }
  0x30   :  { %529 = vmatpush.msrb.mxu2 %v1720_v39 }
  0x31   :  { %659 = vmatpush.msra.mxu1 %v1715_v38 }
  0x32   :  { %530 = vmatpush.msrb.mxu2 %v1730_v42 }
  0x33   :  { %660 = vmatpush.msra.mxu1 %v1720_v39 }
  0x35   :  { %661 = vmatpush.msra.mxu1 %v1730_v42 }
  0x8f   :  { %v138_v9 = vpop.f32.mrf.mxu0 }
  0x90   :  { %v139_v10 = vadd.f32 %v1685_v8, %v138_v9 }
  0x93   :  { %v203_v11 = vpop.f32.mrf.mxu1 }
  0x94   :  { %v206_v12 = vadd.f32 %v203_v11, %v139_v10 }
  0x96   :  { %1343 = vtanh.f32 %v206_v12  ;;  %v1296_v14 = vmul.f32 -1.442695, %v206_v12 }
  0x98   :  { %1345 = vpow2.f32 %v1296_v14 }
  0x9c   :  { %v1344_v13 = vpop.eup %1343 }
  0x9d   :  { %229 = vrot.lane.b32.xlu0 %v1344_v13, %s1581_s16  ;;  %v141_v46 = vpop.f32.mrf.mxu0 }
  0x9e   :  { %v1346_v15 = vpop.eup %1345  ;;  %v142_v47 = vadd.f32 %v1685_v8, %v141_v46  ;;  %v84_v46 = vld [vmem:[#allocation2 + $0x10] sm:$0xff] }
  0x9f   :  { %v210_v16 = vadd.f32 1.0, %v1346_v15  ;;  %1290 = vmatmul.msk.f32.gmra.mxu0 %vm96_vm0, %v84_v46 }
  0xa1   :  { %1347 = vrcp.f32 %v210_v16  ;;  %v222_v22 = vand.u32 2147483648, %v210_v16  ;;  %vm216_vm2 = vweird.f32 %v210_v16  ;;  %v220_v23 = vand.u32 2147483647, %v210_v16 }
  0xa3   :  { %v223_v25 = vor.u32 1.1754944e-38, %v222_v22  ;;  %vm221_vm4 = vcmp.eq.f32.partialorder %v220_v23, 8.507059e+37 }
  0xa7   :  { %v1348_v17 = vpop.eup %1347 }
  0xa8   :  { %v212_v18 = vmul.f32 %v1348_v17, %v210_v16  ;;  %vm217_vm1 = vweird.f32 %v1348_v17 }
  0xa9   :  { %vm218_vm3 = vmor %vm216_vm2, %vm217_vm1 }
  0xaa   :  { %v213_v19 = vsub.f32 1.0, %v212_v18 }
  0xac   :  { %v214_v20 = vmul.f32 %v1348_v17, %v213_v19 }
  0xae   :  { %v215_v21 = vadd.f32 %v1348_v17, %v214_v20 }
  0xb0   :  { %v219_v24 = vsel %vm218_vm3, %v1348_v17, %v215_v21 }
  0xb1   :  { %v224_v27 = vsel %vm221_vm4, %v223_v25, %v219_v24 }
  0xb2   :  { %v227_v29 = vmul.f32 0.0, %v224_v27 }
 0x10f   :  { %v230_v26 = vpop.permute.xlu0 %229 }
 0x110   :  { %v232_v28 = vmul.f32 %v230_v26, %v224_v27 }
 0x112   :  { %234 = vrot.lane.b32.xlu0 %v232_v28, %s1582_s17 }
 0x184   :  { %v235_v30 = vpop.permute.xlu0 %234 }
 0x185   :  { %v1690_v31 = vadd.f32 %v235_v30, %v227_v29 }
 0x187   :  { %1349 = vtanh.f32 %v1690_v31 }
 0x18d   :  { %v1350_v32 = vpop.eup %1349 }
 0x18e   :  { %240 = vrot.lane.b32.xlu1 %v1350_v32, %s1581_s16 }
 0x200   :  { %v241_v40 = vpop.permute.xlu1 %240 }
 0x201   :  { %v243_v41 = vmul.f32 %v241_v40, %v224_v27 }
 0x203   :  { %245 = vrot.lane.b32.xlu1 %v243_v41, %s1582_s17 }
 0x275   :  { %v246_v44 = vpop.permute.xlu1 %245 }
 0x276   :  { %1299 = vmatmul.msk.f32.vlgmr.msra.gmra.mxu3 %vm182_vm5, %v246_v44  ;;  %v248_v45 = vsel %vm182_vm5, %v246_v44, 0.0 }
 0x277   :  { %1297 = vmatmul.msk.f32.vlgmr.msra.gmra.mxu2 %vm249_vm6, %v248_v45  ;;  %588 = vmatpush.msra.mxu3 %v1652_v0 }
 0x278   :  { %785 = vmatpush.msra.mxu2 %v1694_v33 }
 0x279   :  { %589 = vmatpush.msra.mxu3 %v1657_v2 }
 0x27a   :  { %786 = vmatpush.msra.mxu2 %v1696_v34 }
 0x27b   :  { %590 = vmatpush.msra.mxu3 %v1663_v5 }
 0x27c   :  { %787 = vmatpush.msra.mxu2 %v1700_v35 }
 0x27d   :  { %591 = vmatpush.msra.mxu3 %v1671_v6 }
 0x27e   :  { %788 = vmatpush.msra.mxu2 %v1705_v36 }
 0x280   :  { %789 = vmatpush.msra.mxu2 %v1710_v37 }
 0x282   :  { %790 = vmatpush.msra.mxu2 %v1715_v38 }
 0x284   :  { %791 = vmatpush.msra.mxu2 %v1720_v39 }
 0x286   :  { %792 = vmatpush.msra.mxu2 %v1730_v42 }
 0x2f9   :  { %v331_v48 = vpop.f32.mrf.mxu3 }
 0x2fa   :  { %v334_v49 = vadd.f32 %v331_v48, %v142_v47  ;;  %v270_v51 = vpop.f32.mrf.mxu2 }
 0x2fb   :  { %v271_v52 = vadd.f32 %v1771_v50, %v270_v51  ;;  %v144_v51 = vpop.f32.mrf.mxu0 }
 0x2fc   :  { %1351 = vtanh.f32 %v334_v49  ;;  %v1300_v55 = vmul.f32 -1.442695, %v334_v49 }
 0x2fd   :  { %1353 = vtanh.f32 %v271_v52  ;;  %v1298_v56 = vmul.f32 -1.442695, %v271_v52  ;;  %v145_v52 = vadd.f32 %v1685_v8, %v144_v51 }
 0x2fe   :  { %1355 = vpow2.f32 %v1300_v55 }
 0x2ff   :  { %1357 = vpow2.f32 %v1298_v56 }
 0x302   :  { %v1352_v53 = vpop.eup %1351 }
 0x303   :  { %357 = vrot.lane.b32.xlu2 %v1352_v53, %s1581_s16  ;;  %v1354_v54 = vpop.eup %1353 }
 0x304   :  { %v1356_v57 = vpop.eup %1355 }
 0x305   :  { %v338_v58 = vadd.f32 1.0, %v1356_v57  ;;  %v1358_v59 = vpop.eup %1357 }
 0x306   :  { %v276_v60 = vadd.f32 1.0, %v1358_v59 }
 0x307   :  { %1359 = vrcp.f32 %v338_v58  ;;  %v350_v10 = vand.u32 2147483648, %v338_v58  ;;  %vm344_vm8 = vweird.f32 %v338_v58  ;;  %v348_v11 = vand.u32 2147483647, %v338_v58 }
 0x308   :  { %1361 = vrcp.f32 %v276_v60  ;;  %v288_v19 = vand.u32 2147483648, %v276_v60  ;;  %vm282_vm12 = vweird.f32 %v276_v60  ;;  %v286_v20 = vand.u32 2147483647, %v276_v60 }
 0x309   :  { %v351_v14 = vor.u32 1.1754944e-38, %v350_v10  ;;  %vm349_vm10 = vcmp.eq.f32.partialorder %v348_v11, 8.507059e+37 }
 0x30a   :  { %v289_v22 = vor.u32 1.1754944e-38, %v288_v19  ;;  %vm287_vm14 = vcmp.eq.f32.partialorder %v286_v20, 8.507059e+37 }
 0x30b   :  { %295 = vrot.lane.b32.xlu2 %v1354_v54, %s1581_s16 }
 0x30d   :  { %v1360_v61 = vpop.eup %1359 }
 0x30e   :  { %v340_v62 = vmul.f32 %v1360_v61, %v338_v58  ;;  %v1362_v1 = vpop.eup %1361  ;;  %vm345_vm7 = vweird.f32 %v1360_v61 }
 0x30f   :  { %v278_v4 = vmul.f32 %v1362_v1, %v276_v60  ;;  %vm346_vm9 = vmor %vm344_vm8, %vm345_vm7  ;;  %vm283_vm11 = vweird.f32 %v1362_v1 }
 0x310   :  { %v341_v63 = vsub.f32 1.0, %v340_v62  ;;  %vm284_vm13 = vmor %vm282_vm12, %vm283_vm11 }
 0x311   :  { %v279_v9 = vsub.f32 1.0, %v278_v4 }
 0x312   :  { %v342_v3 = vmul.f32 %v1360_v61, %v341_v63 }
 0x313   :  { %v280_v13 = vmul.f32 %v1362_v1, %v279_v9 }
 0x314   :  { %v343_v7 = vadd.f32 %v1360_v61, %v342_v3 }
 0x315   :  { %v281_v18 = vadd.f32 %v1362_v1, %v280_v13 }
 0x316   :  { %v347_v12 = vsel %vm346_vm9, %v1360_v61, %v343_v7 }
 0x317   :  { %v352_v16 = vsel %vm349_vm10, %v351_v14, %v347_v12  ;;  %v285_v21 = vsel %vm284_vm13, %v1362_v1, %v281_v18 }
 0x318   :  { %v290_v24 = vsel %vm287_vm14, %v289_v22, %v285_v21  ;;  %v355_v26 = vmul.f32 %v352_v16, %v1690_v31 }
 0x319   :  { %v293_v29 = vmul.f32 0.0, %v290_v24 }
 0x35d   :  { %v358_v15 = vpop.permute.xlu2 %357 }
 0x35e   :  { %v360_v17 = vmul.f32 %v358_v15, %v352_v16 }
 0x360   :  { %362 = vrot.lane.b32.xlu0 %v360_v17, %s1582_s17 }
 0x365   :  { %v296_v23 = vpop.permute.xlu2 %295 }
 0x366   :  { %v298_v25 = vmul.f32 %v296_v23, %v290_v24 }
 0x368   :  { %300 = vrot.lane.b32.xlu1 %v298_v25, %s1582_s17 }
 0x3d2   :  { %v363_v27 = vpop.permute.xlu0 %362 }
 0x3d3   :  { %v1779_v28 = vadd.f32 %v363_v27, %v355_v26 }
 0x3d5   :  { %1363 = vtanh.f32 %v1779_v28 }
 0x3da   :  { %v301_v30 = vpop.permute.xlu1 %300 }
 0x3db   :  { %v1364_v32 = vpop.eup %1363  ;;  %v1782_v40 = vadd.f32 %v301_v30, %v293_v29 }
 0x3dc   :  { %368 = vrot.lane.b32.xlu2 %v1364_v32, %s1581_s16 }
 0x3dd   :  { %1365 = vtanh.f32 %v1782_v40 }
 0x3e3   :  { %v1366_v41 = vpop.eup %1365 }
 0x3e4   :  { %306 = vrot.lane.b32.xlu0 %v1366_v41, %s1581_s16 }
 0x436   :  { %v369_v43 = vpop.permute.xlu2 %368 }
 0x437   :  { %v371_v44 = vmul.f32 %v369_v43, %v352_v16 }
 0x439   :  { %373 = vrot.lane.b32.xlu1 %v371_v44, %s1582_s17 }
 0x456   :  { %v307_v31 = vpop.permute.xlu0 %306 }
 0x457   :  { %v1788_v45 = vmul.f32 %v307_v31, %v290_v24 }
 0x459   :  { %377 = vrot.lane.b32.xlu2 %v1788_v45, %s1581_s16 }
 0x4ab   :  { %v374_v47 = vpop.permute.xlu1 %373 }
 0x4ac   :  { %1303 = vmatmul.msk.f32.vlgmr.msrb.gmra.mxu3 %vm182_vm5, %v374_v47 }
 0x4ad   :  { %719 = vmatpush.msrb.mxu3 %v1652_v0 }
 0x4af   :  { %720 = vmatpush.msrb.mxu3 %v1657_v2 }
 0x4b1   :  { %721 = vmatpush.msrb.mxu3 %v1663_v5 }
 0x4b3   :  { %v378_v48 = vpop.permute.xlu2 %377  ;;  %722 = vmatpush.msrb.mxu3 %v1671_v6 }
 0x4b4   :  { %v380_v49 = vsel %vm182_vm5, %v374_v47, %v378_v48 }
 0x4b5   :  { %1301 = vmatmul.msk.f32.vlgmr.msrb.gmra.mxu1 %vm249_vm6, %v380_v49 }
 0x4b6   :  { %916 = vmatpush.msrb.mxu1 %v1694_v33 }
 0x4b8   :  { %917 = vmatpush.msrb.mxu1 %v1696_v34 }
 0x4ba   :  { %918 = vmatpush.msrb.mxu1 %v1700_v35 }
 0x4bc   :  { %919 = vmatpush.msrb.mxu1 %v1705_v36 }
 0x4be   :  { %920 = vmatpush.msrb.mxu1 %v1710_v37 }
 0x4c0   :  { %921 = vmatpush.msrb.mxu1 %v1715_v38 }
 0x4c2   :  { %922 = vmatpush.msrb.mxu1 %v1720_v39 }
 0x4c4   :  { %923 = vmatpush.msrb.mxu1 %v1730_v42 }
 0x52f   :  { %v462_v53 = vpop.f32.mrf.mxu3 }
 0x530   :  { %v465_v54 = vadd.f32 %v462_v53, %v145_v52  ;;  %v85_v53 = vld [vmem:[#allocation2 + $0x18] sm:$0xff] }
 0x531   :  { %1291 = vmatmul.msk.f32.gmra.mxu0 %vm96_vm0, %v85_v53 }
 0x532   :  { %1367 = vtanh.f32 %v465_v54  ;;  %v401_v55 = vpop.f32.mrf.mxu1  ;;  %v1304_v59 = vmul.f32 -1.442695, %v465_v54 }
 0x533   :  { %v402_v56 = vadd.f32 %v1771_v50, %v401_v55 }
 0x535   :  { %1369 = vtanh.f32 %v402_v56  ;;  %v1302_v60 = vmul.f32 -1.442695, %v402_v56 }
 0x536   :  { %1371 = vpow2.f32 %v1304_v59 }
 0x537   :  { %1373 = vpow2.f32 %v1302_v60 }
 0x538   :  { %v1368_v57 = vpop.eup %1367 }
 0x539   :  { %488 = vrot.lane.b32.xlu0 %v1368_v57, %s1581_s16 }
 0x53b   :  { %v1370_v58 = vpop.eup %1369 }
 0x53c   :  { %426 = vrot.lane.b32.xlu1 %v1370_v58, %s1581_s16  ;;  %v1372_v61 = vpop.eup %1371 }
 0x53d   :  { %v1374_v62 = vpop.eup %1373  ;;  %v469_v63 = vadd.f32 1.0, %v1372_v61 }
 0x53e   :  { %v407_v1 = vadd.f32 1.0, %v1374_v62 }
 0x53f   :  { %1375 = vrcp.f32 %v469_v63  ;;  %v481_v15 = vand.u32 2147483648, %v469_v63  ;;  %vm475_vm1 = vweird.f32 %v469_v63  ;;  %v479_v16 = vand.u32 2147483647, %v469_v63 }
 0x540   :  { %1377 = vrcp.f32 %v407_v1  ;;  %v419_v19 = vand.u32 2147483648, %v407_v1  ;;  %vm413_vm4 = vweird.f32 %v407_v1  ;;  %v417_v21 = vand.u32 2147483647, %v407_v1 }
 0x541   :  { %v482_v20 = vor.u32 1.1754944e-38, %v481_v15  ;;  %vm480_vm7 = vcmp.eq.f32.partialorder %v479_v16, 8.507059e+37 }
 0x542   :  { %v420_v26 = vor.u32 1.1754944e-38, %v419_v19  ;;  %vm418_vm9 = vcmp.eq.f32.partialorder %v417_v21, 8.507059e+37 }
 0x545   :  { %v1376_v3 = vpop.eup %1375 }
 0x546   :  { %v1378_v4 = vpop.eup %1377  ;;  %v471_v7 = vmul.f32 %v1376_v3, %v469_v63  ;;  %vm476_vm15 = vweird.f32 %v1376_v3 }
 0x547   :  { %v409_v9 = vmul.f32 %v1378_v4, %v407_v1  ;;  %vm477_vm2 = vmor %vm475_vm1, %vm476_vm15  ;;  %vm414_vm3 = vweird.f32 %v1378_v4 }
 0x548   :  { %v472_v10 = vsub.f32 1.0, %v471_v7  ;;  %vm415_vm8 = vmor %vm413_vm4, %vm414_vm3 }
 0x549   :  { %v410_v11 = vsub.f32 1.0, %v409_v9 }
 0x54a   :  { %v473_v12 = vmul.f32 %v1376_v3, %v472_v10 }
 0x54b   :  { %v411_v13 = vmul.f32 %v1378_v4, %v410_v11 }
 0x54c   :  { %v474_v14 = vadd.f32 %v1376_v3, %v473_v12 }
 0x54d   :  { %v412_v17 = vadd.f32 %v1378_v4, %v411_v13 }
 0x54e   :  { %v478_v18 = vsel %vm477_vm2, %v1376_v3, %v474_v14 }
 0x54f   :  { %v483_v22 = vsel %vm480_vm7, %v482_v20, %v478_v18  ;;  %v416_v24 = vsel %vm415_vm8, %v1378_v4, %v412_v17 }
 0x550   :  { %v421_v29 = vsel %vm418_vm9, %v420_v26, %v416_v24  ;;  %v486_v32 = vmul.f32 %v483_v22, %v1779_v28 }
 0x551   :  { %v424_v31 = vmul.f32 %v421_v29, %v1782_v40 }
 0x5ab   :  { %v489_v23 = vpop.permute.xlu0 %488 }
 0x5ac   :  { %v491_v25 = vmul.f32 %v489_v23, %v483_v22 }
 0x5ae   :  { %v427_v27 = vpop.permute.xlu1 %426  ;;  %493 = vrot.lane.b32.xlu2 %v491_v25, %s1582_s17  ;;  %v147_v56 = vpop.f32.mrf.mxu0 }
 0x5af   :  { %v429_v30 = vmul.f32 %v427_v27, %v421_v29  ;;  %v148_v57 = vadd.f32 %v1685_v8, %v147_v56 }
 0x5b1   :  { %431 = vrot.lane.b32.xlu0 %v429_v30, %s1582_s17 }
 0x608   :  { %v494_v41 = vpop.permute.xlu2 %493 }
 0x609   :  { %v1815_v43 = vadd.f32 %v494_v41, %v486_v32 }
 0x60b   :  { %1379 = vtanh.f32 %v1815_v43 }
 0x611   :  { %v1380_v44 = vpop.eup %1379 }
 0x612   :  { %499 = vrot.lane.b32.xlu1 %v1380_v44, %s1581_s16 }
 0x623   :  { %v432_v46 = vpop.permute.xlu0 %431 }
 0x624   :  { %v1820_v47 = vadd.f32 %v432_v46, %v424_v31 }
 0x626   :  { %1381 = vtanh.f32 %v1820_v47 }
 0x62c   :  { %v1382_v48 = vpop.eup %1381 }
 0x62d   :  { %437 = vrot.lane.b32.xlu2 %v1382_v48, %s1581_s16 }
 0x684   :  { %v500_v49 = vpop.permute.xlu1 %499 }
 0x685   :  { %v502_v28 = vmul.f32 %v500_v49, %v483_v22 }
 0x687   :  { %504 = vrot.lane.b32.xlu0 %v502_v28, %s1582_s17  ;;  %v438_v51 = vpop.permute.xlu2 %437 }
 0x688   :  { %v1825_v52 = vmul.f32 %v438_v51, %v421_v29 }
 0x68a   :  { %508 = vrot.lane.b32.xlu1 %v1825_v52, %s1581_s16 }
 0x6f9   :  { %v505_v40 = vpop.permute.xlu0 %504 }
 0x6fa   :  { %1307 = vmatmul.msk.f32.vlgmr.msra.gmra.mxu3 %vm182_vm5, %v505_v40 }
 0x6fb   :  { %850 = vmatpush.msra.mxu3 %v1652_v0 }
 0x6fc   :  { %v509_v54 = vpop.permute.xlu1 %508 }
 0x6fd   :  { %v511_v55 = vsel %vm182_vm5, %v505_v40, %v509_v54  ;;  %851 = vmatpush.msra.mxu3 %v1657_v2 }
 0x6fe   :  { %1305 = vmatmul.msk.f32.vlgmr.msrb.gmra.mxu2 %vm249_vm6, %v511_v55 }
 0x6ff   :  { %852 = vmatpush.msra.mxu3 %v1663_v5  ;;  %1047 = vmatpush.msrb.mxu2 %v1694_v33 }
 0x701   :  { %853 = vmatpush.msra.mxu3 %v1671_v6  ;;  %1048 = vmatpush.msrb.mxu2 %v1696_v34 }
 0x703   :  { %1049 = vmatpush.msrb.mxu2 %v1700_v35 }
 0x705   :  { %1050 = vmatpush.msrb.mxu2 %v1705_v36 }
 0x707   :  { %1051 = vmatpush.msrb.mxu2 %v1710_v37 }
 0x709   :  { %1052 = vmatpush.msrb.mxu2 %v1715_v38 }
 0x70b   :  { %1053 = vmatpush.msrb.mxu2 %v1720_v39 }
 0x70d   :  { %1054 = vmatpush.msrb.mxu2 %v1730_v42 }
 0x77d   :  { %v593_v33 = vpop.f32.mrf.mxu3 }
 0x77e   :  { %v596_v58 = vadd.f32 %v593_v33, %v148_v57 }
 0x780   :  { %1383 = vtanh.f32 %v596_v58  ;;  %v1308_v37 = vmul.f32 -1.442695, %v596_v58 }
 0x781   :  { %v532_v59 = vpop.f32.mrf.mxu2 }
 0x782   :  { %v533_v34 = vadd.f32 %v1771_v50, %v532_v59 }
 0x784   :  { %1385 = vtanh.f32 %v533_v34  ;;  %v1306_v61 = vmul.f32 -1.442695, %v533_v34 }
 0x785   :  { %1387 = vpow2.f32 %v1308_v37 }
 0x786   :  { %v1384_v35 = vpop.eup %1383 }
 0x787   :  { %619 = vrot.lane.b32.xlu2 %v1384_v35, %s1581_s16 }
 0x78a   :  { %v1386_v36 = vpop.eup %1385 }
 0x78b   :  { %557 = vrot.lane.b32.xlu0 %v1386_v36, %s1581_s16  ;;  %v1388_v38 = vpop.eup %1387 }
 0x78c   :  { %v600_v39 = vadd.f32 1.0, %v1388_v38 }
 0x78e   :  { %1389 = vrcp.f32 %v600_v39  ;;  %v612_v4 = vand.u32 2147483648, %v600_v39  ;;  %vm606_vm11 = vweird.f32 %v600_v39  ;;  %v610_v7 = vand.u32 2147483647, %v600_v39 }
 0x78f   :  { %1391 = vpow2.f32 %v1306_v61 }
 0x790   :  { %v613_v11 = vor.u32 1.1754944e-38, %v612_v4  ;;  %vm611_vm13 = vcmp.eq.f32.partialorder %v610_v7, 8.507059e+37 }
 0x794   :  { %v1390_v42 = vpop.eup %1389 }
 0x795   :  { %v602_v60 = vmul.f32 %v1390_v42, %v600_v39  ;;  %v1392_v1 = vpop.eup %1391  ;;  %vm607_vm10 = vweird.f32 %v1390_v42 }
 0x796   :  { %v538_v9 = vadd.f32 1.0, %v1392_v1  ;;  %vm608_vm12 = vmor %vm606_vm11, %vm607_vm10 }
 0x797   :  { %v603_v62 = vsub.f32 1.0, %v602_v60 }
 0x798   :  { %1393 = vrcp.f32 %v538_v9  ;;  %v550_v20 = vand.u32 2147483648, %v538_v9  ;;  %vm544_vm15 = vweird.f32 %v538_v9  ;;  %v548_v21 = vand.u32 2147483647, %v538_v9 }
 0x799   :  { %v604_v63 = vmul.f32 %v1390_v42, %v603_v62 }
 0x79a   :  { %v551_v23 = vor.u32 1.1754944e-38, %v550_v20  ;;  %vm549_vm2 = vcmp.eq.f32.partialorder %v548_v21, 8.507059e+37 }
 0x79b   :  { %v605_v3 = vadd.f32 %v1390_v42, %v604_v63 }
 0x79d   :  { %v609_v10 = vsel %vm608_vm12, %v1390_v42, %v605_v3 }
 0x79e   :  { %v614_v13 = vsel %vm611_vm13, %v613_v11, %v609_v10  ;;  %v1394_v15 = vpop.eup %1393 }
 0x79f   :  { %v540_v16 = vmul.f32 %v1394_v15, %v538_v9  ;;  %vm545_vm14 = vweird.f32 %v1394_v15  ;;  %v617_v27 = vmul.f32 %v614_v13, %v1815_v43 }
 0x7a0   :  { %vm546_vm1 = vmor %vm544_vm15, %vm545_vm14 }
 0x7a1   :  { %v541_v17 = vsub.f32 1.0, %v540_v16 }
 0x7a3   :  { %v542_v18 = vmul.f32 %v1394_v15, %v541_v17 }
 0x7a5   :  { %v543_v19 = vadd.f32 %v1394_v15, %v542_v18 }
 0x7a7   :  { %v547_v22 = vsel %vm546_vm1, %v1394_v15, %v543_v19 }
 0x7a8   :  { %v552_v25 = vsel %vm549_vm2, %v551_v23, %v547_v22 }
 0x7a9   :  { %v555_v32 = vmul.f32 %v552_v25, %v1820_v47  ;;  %v86_v47 = vld [vmem:[#allocation2 + $0x20] sm:$0xff] }
 0x7aa   :  { %1292 = vmatmul.msk.f32.gmra.mxu0 %vm96_vm0, %v86_v47 }
 0x7e1   :  { %v620_v12 = vpop.permute.xlu2 %619 }
 0x7e2   :  { %v622_v14 = vmul.f32 %v620_v12, %v614_v13 }
 0x7e4   :  { %624 = vrot.lane.b32.xlu1 %v622_v14, %s1582_s17 }
 0x7fd   :  { %v558_v24 = vpop.permute.xlu0 %557 }
 0x7fe   :  { %v560_v26 = vmul.f32 %v558_v24, %v552_v25 }
 0x800   :  { %562 = vrot.lane.b32.xlu2 %v560_v26, %s1582_s17 }
 0x827   :  { %v150_v54 = vpop.f32.mrf.mxu0 }
 0x828   :  { %v151_v55 = vadd.f32 %v1685_v8, %v150_v54 }
 0x856   :  { %v625_v29 = vpop.permute.xlu1 %624 }
 0x857   :  { %v1852_v30 = vadd.f32 %v625_v29, %v617_v27 }
 0x859   :  { %1395 = vtanh.f32 %v1852_v30 }
 0x85a   :  { %v563_v41 = vpop.permute.xlu2 %562 }
 0x85b   :  { %v1856_v44 = vadd.f32 %v563_v41, %v555_v32 }
 0x85d   :  { %1397 = vtanh.f32 %v1856_v44 }
 0x85f   :  { %v1396_v31 = vpop.eup %1395 }
 0x860   :  { %630 = vrot.lane.b32.xlu0 %v1396_v31, %s1581_s16 }
 0x863   :  { %v1398_v46 = vpop.eup %1397 }
 0x864   :  { %568 = vrot.lane.b32.xlu1 %v1398_v46, %s1581_s16 }
 0x8d2   :  { %v631_v48 = vpop.permute.xlu0 %630 }
 0x8d3   :  { %v633_v43 = vmul.f32 %v631_v48, %v614_v13 }
 0x8d5   :  { %635 = vrot.lane.b32.xlu2 %v633_v43, %s1582_s17 }
 0x8d6   :  { %v569_v49 = vpop.permute.xlu1 %568 }
 0x8d7   :  { %v1862_v28 = vmul.f32 %v569_v49, %v552_v25  ;;  %v87_v49 = vld [vmem:[#allocation2 + $0x28] sm:$0xff] }
 0x8d8   :  { %1293 = vmatmul.msk.f32.gmra.mxu0 %vm96_vm0, %v87_v49 }
 0x8d9   :  { %639 = vrot.lane.b32.xlu0 %v1862_v28, %s1581_s16 }
 0x92f   :  { %v636_v51 = vpop.permute.xlu2 %635 }
 0x930   :  { %1311 = vmatmul.msk.f32.vlgmr.msrb.gmra.mxu3 %vm182_vm5, %v636_v51 }
 0x931   :  { %981 = vmatpush.msrb.mxu3 %v1652_v0 }
 0x933   :  { %982 = vmatpush.msrb.mxu3 %v1657_v2 }
 0x935   :  { %983 = vmatpush.msrb.mxu3 %v1663_v5 }
 0x937   :  { %984 = vmatpush.msrb.mxu3 %v1671_v6 }
 0x94b   :  { %v640_v53 = vpop.permute.xlu0 %639 }
 0x94c   :  { %v642_v40 = vsel %vm182_vm5, %v636_v51, %v640_v53 }
 0x94d   :  { %1309 = vmatmul.msk.f32.vlgmr.msra.gmra.mxu1 %vm249_vm6, %v642_v40 }
 0x955   :  { %v153_v40 = vpop.f32.mrf.mxu0 }
 0x956   :  { %v154_v54 = vadd.f32 %v1685_v8, %v153_v40 }
 0x9b3   :  { %v724_v56 = vpop.f32.mrf.mxu3 }
 0x9b4   :  { %v727_v57 = vadd.f32 %v724_v56, %v151_v55 }
 0x9b6   :  { %1399 = vtanh.f32 %v727_v57  ;;  %v1312_v36 = vmul.f32 -1.442695, %v727_v57 }
 0x9bc   :  { %v1400_v33 = vpop.eup %1399 }
 0x9bd   :  { %750 = vrot.lane.b32.xlu1 %v1400_v33, %s1581_s16 }
 0x9ca   :  { %v663_v58 = vpop.f32.mrf.mxu1 }
 0x9cb   :  { %v664_v59 = vadd.f32 %v1771_v50, %v663_v58 }
 0x9cd   :  { %1401 = vtanh.f32 %v664_v59  ;;  %v1310_v35 = vmul.f32 -1.442695, %v664_v59 }
 0x9cf   :  { %1403 = vpow2.f32 %v1310_v35 }
 0x9d0   :  { %1405 = vpow2.f32 %v1312_v36 }
 0x9d3   :  { %v1402_v34 = vpop.eup %1401 }
 0x9d4   :  { %688 = vrot.lane.b32.xlu2 %v1402_v34, %s1581_s16 }
 0x9d5   :  { %v1404_v37 = vpop.eup %1403 }
 0x9d6   :  { %v1406_v38 = vpop.eup %1405  ;;  %v669_v39 = vadd.f32 1.0, %v1404_v37 }
 0x9d7   :  { %v731_v42 = vadd.f32 1.0, %v1406_v38 }
 0x9d8   :  { %1407 = vrcp.f32 %v669_v39  ;;  %v681_v10 = vand.u32 2147483648, %v669_v39  ;;  %vm675_vm7 = vweird.f32 %v669_v39  ;;  %v679_v12 = vand.u32 2147483647, %v669_v39 }
 0x9d9   :  { %1409 = vrcp.f32 %v731_v42  ;;  %v743_v13 = vand.u32 2147483648, %v731_v42  ;;  %vm737_vm9 = vweird.f32 %v731_v42  ;;  %v741_v14 = vand.u32 2147483647, %v731_v42 }
 0x9da   :  { %v682_v16 = vor.u32 1.1754944e-38, %v681_v10  ;;  %vm680_vm11 = vcmp.eq.f32.partialorder %v679_v12, 8.507059e+37 }
 0x9db   :  { %v744_v18 = vor.u32 1.1754944e-38, %v743_v13  ;;  %vm742_vm12 = vcmp.eq.f32.partialorder %v741_v14, 8.507059e+37 }
 0x9de   :  { %v1408_v60 = vpop.eup %1407 }
 0x9df   :  { %v1410_v61 = vpop.eup %1409  ;;  %v671_v62 = vmul.f32 %v1408_v60, %v669_v39  ;;  %vm676_vm3 = vweird.f32 %v1408_v60 }
 0x9e0   :  { %v733_v63 = vmul.f32 %v1410_v61, %v731_v42  ;;  %vm738_vm4 = vweird.f32 %v1410_v61  ;;  %vm677_vm8 = vmor %vm675_vm7, %vm676_vm3 }
 0x9e1   :  { %v672_v1 = vsub.f32 1.0, %v671_v62  ;;  %vm739_vm10 = vmor %vm737_vm9, %vm738_vm4 }
 0x9e2   :  { %v734_v3 = vsub.f32 1.0, %v733_v63 }
 0x9e3   :  { %v673_v4 = vmul.f32 %v1408_v60, %v672_v1 }
 0x9e4   :  { %v735_v7 = vmul.f32 %v1410_v61, %v734_v3 }
 0x9e5   :  { %v674_v9 = vadd.f32 %v1408_v60, %v673_v4 }
 0x9e6   :  { %v736_v11 = vadd.f32 %v1410_v61, %v735_v7 }
 0x9e7   :  { %v678_v15 = vsel %vm677_vm8, %v1408_v60, %v674_v9 }
 0x9e8   :  { %v740_v17 = vsel %vm739_vm10, %v1410_v61, %v736_v11  ;;  %v683_v20 = vsel %vm680_vm11, %v682_v16, %v678_v15 }
 0x9e9   :  { %v745_v22 = vsel %vm742_vm12, %v744_v18, %v740_v17  ;;  %v686_v25 = vmul.f32 %v683_v20, %v1856_v44 }
 0x9ea   :  { %v748_v27 = vmul.f32 %v745_v22, %v1852_v30 }
 0xa2e   :  { %v689_v19 = vpop.permute.xlu2 %688 }
 0xa2f   :  { %v691_v21 = vmul.f32 %v689_v19, %v683_v20  ;;  %v751_v23 = vpop.permute.xlu1 %750 }
 0xa30   :  { %v753_v24 = vmul.f32 %v751_v23, %v745_v22 }
 0xa31   :  { %693 = vrot.lane.b32.xlu1 %v691_v21, %s1582_s17 }
 0xa32   :  { %755 = vrot.lane.b32.xlu0 %v753_v24, %s1582_s17 }
 0xaa3   :  { %v694_v26 = vpop.permute.xlu1 %693 }
 0xaa4   :  { %v1882_v29 = vadd.f32 %v694_v26, %v686_v25  ;;  %v756_v32 = vpop.permute.xlu0 %755 }
 0xaa5   :  { %v1884_v41 = vadd.f32 %v756_v32, %v748_v27 }
 0xaa6   :  { %1411 = vtanh.f32 %v1882_v29 }
 0xaa7   :  { %1413 = vtanh.f32 %v1884_v41 }
 0xaac   :  { %v1412_v31 = vpop.eup %1411 }
 0xaad   :  { %v1414_v46 = vpop.eup %1413  ;;  %699 = vrot.lane.b32.xlu0 %v1412_v31, %s1581_s16 }
 0xaae   :  { %761 = vrot.lane.b32.xlu2 %v1414_v46, %s1581_s16  ;;  %v88_v46 = vld [vmem:[#allocation2 + $0x30] sm:$0xff] }
 0xaaf   :  { %1294 = vmatmul.msk.f32.gmra.mxu0 %vm96_vm0, %v88_v46 }
 0xb08   :  { %v762_v48 = vpop.permute.xlu2 %761 }
 0xb09   :  { %v764_v44 = vmul.f32 %v762_v48, %v745_v22 }
 0xb0b   :  { %766 = vrot.lane.b32.xlu1 %v764_v44, %s1582_s17 }
 0xb1f   :  { %v700_v30 = vpop.permute.xlu0 %699 }
 0xb20   :  { %v1891_v43 = vmul.f32 %v700_v30, %v683_v20 }
 0xb22   :  { %770 = vrot.lane.b32.xlu2 %v1891_v43, %s1581_s16 }
 0xb2c   :  { %v156_v30 = vpop.f32.mrf.mxu0 }
 0xb7c   :  { %v771_v47 = vpop.permute.xlu2 %770 }
 0xb7d   :  { %v767_v51 = vpop.permute.xlu1 %766 }
 0xb7e   :  { %v773_v53 = vsel %vm182_vm5, %v767_v51, %v771_v47  ;;  %1315 = vmatmul.msk.f32.vlgmr.msra.gmra.mxu3 %vm182_vm5, %v767_v51  ;;  %v1932_v51 = vld [vmem:[%s2022_s4] ss:$0 sm:$0xff] }
 0xb7f   :  { %1313 = vmatmul.msk.f32.vlgmr.msra.gmra.mxu2 %vm249_vm6, %v773_v53  ;;  %1112 = vmatpush.msra.mxu3 %v1652_v0  ;;  %v157_v53 = vadd.f32 %v1932_v51, %v156_v30 }
 0xb81   :  { %1113 = vmatpush.msra.mxu3 %v1657_v2 }
 0xb83   :  { %1114 = vmatpush.msra.mxu3 %v1663_v5 }
 0xb85   :  { %1115 = vmatpush.msra.mxu3 %v1671_v6 }
 0xc01   :  { %v855_v55 = vpop.f32.mrf.mxu3 }
 0xc02   :  { %v858_v56 = vadd.f32 %v855_v55, %v154_v54  ;;  %v794_v57 = vpop.f32.mrf.mxu2 }
 0xc03   :  { %v795_v33 = vadd.f32 %v1771_v50, %v794_v57 }
 0xc04   :  { %1415 = vtanh.f32 %v858_v56  ;;  %v1316_v0 = vmul.f32 -1.442695, %v858_v56 }
 0xc05   :  { %1417 = vtanh.f32 %v795_v33  ;;  %v1314_v2 = vmul.f32 -1.442695, %v795_v33 }
 0xc06   :  { %1419 = vpow2.f32 %v1316_v0 }
 0xc07   :  { %1421 = vpow2.f32 %v1314_v2 }
 0xc0a   :  { %v1416_v58 = vpop.eup %1415 }
 0xc0b   :  { %v1418_v59 = vpop.eup %1417  ;;  %881 = vrot.lane.b32.xlu0 %v1416_v58, %s1581_s16 }
 0xc0c   :  { %819 = vrot.lane.b32.xlu1 %v1418_v59, %s1581_s16  ;;  %v1420_v5 = vpop.eup %1419 }
 0xc0d   :  { %v1422_v6 = vpop.eup %1421  ;;  %v862_v8 = vadd.f32 1.0, %v1420_v5 }
 0xc0e   :  { %v800_v34 = vadd.f32 1.0, %v1422_v6 }
 0xc0f   :  { %1423 = vrcp.f32 %v862_v8  ;;  %v874_v63 = vand.u32 2147483648, %v862_v8  ;;  %vm868_vm15 = vweird.f32 %v862_v8  ;;  %v872_v3 = vand.u32 2147483647, %v862_v8 }
 0xc10   :  { %1425 = vrcp.f32 %v800_v34  ;;  %v812_v4 = vand.u32 2147483648, %v800_v34  ;;  %vm806_vm2 = vweird.f32 %v800_v34  ;;  %v810_v7 = vand.u32 2147483647, %v800_v34 }
 0xc11   :  { %v875_v10 = vor.u32 1.1754944e-38, %v874_v63  ;;  %vm873_vm4 = vcmp.eq.f32.partialorder %v872_v3, 8.507059e+37 }
 0xc12   :  { %v813_v12 = vor.u32 1.1754944e-38, %v812_v4  ;;  %vm811_vm7 = vcmp.eq.f32.partialorder %v810_v7, 8.507059e+37 }
 0xc15   :  { %v1424_v35 = vpop.eup %1423 }
 0xc16   :  { %v1426_v36 = vpop.eup %1425  ;;  %v864_v37 = vmul.f32 %v1424_v35, %v862_v8  ;;  %vm869_vm13 = vweird.f32 %v1424_v35 }
 0xc17   :  { %v802_v38 = vmul.f32 %v1426_v36, %v800_v34  ;;  %vm807_vm14 = vweird.f32 %v1426_v36  ;;  %vm870_vm1 = vmor %vm868_vm15, %vm869_vm13 }
 0xc18   :  { %v865_v39 = vsub.f32 1.0, %v864_v37  ;;  %vm808_vm3 = vmor %vm806_vm2, %vm807_vm14 }
 0xc19   :  { %v803_v42 = vsub.f32 1.0, %v802_v38 }
 0xc1a   :  { %v866_v60 = vmul.f32 %v1424_v35, %v865_v39 }
 0xc1b   :  { %v804_v61 = vmul.f32 %v1426_v36, %v803_v42 }
 0xc1c   :  { %v867_v62 = vadd.f32 %v1424_v35, %v866_v60 }
 0xc1d   :  { %v805_v1 = vadd.f32 %v1426_v36, %v804_v61 }
 0xc1e   :  { %v871_v9 = vsel %vm870_vm1, %v1424_v35, %v867_v62 }
 0xc1f   :  { %v809_v11 = vsel %vm808_vm3, %v1426_v36, %v805_v1  ;;  %v876_v14 = vsel %vm873_vm4, %v875_v10, %v871_v9 }
 0xc20   :  { %v814_v17 = vsel %vm811_vm7, %v813_v12, %v809_v11  ;;  %v879_v19 = vmul.f32 %v876_v14, %v1884_v41 }
 0xc21   :  { %v817_v23 = vmul.f32 %v814_v17, %v1882_v29 }
 0xc7d   :  { %v882_v13 = vpop.permute.xlu0 %881 }
 0xc7e   :  { %v884_v15 = vmul.f32 %v882_v13, %v876_v14  ;;  %v820_v16 = vpop.permute.xlu1 %819 }
 0xc7f   :  { %v822_v18 = vmul.f32 %v820_v16, %v814_v17 }
 0xc80   :  { %886 = vrot.lane.b32.xlu2 %v884_v15, %s1582_s17 }
 0xc81   :  { %824 = vrot.lane.b32.xlu0 %v822_v18, %s1582_s17 }
 0xcda   :  { %v887_v20 = vpop.permute.xlu2 %886 }
 0xcdb   :  { %v1910_v21 = vadd.f32 %v887_v20, %v879_v19 }
 0xcdd   :  { %1427 = vtanh.f32 %v1910_v21 }
 0xce3   :  { %v1428_v22 = vpop.eup %1427 }
 0xce4   :  { %892 = vrot.lane.b32.xlu1 %v1428_v22, %s1581_s16 }
 0xcf3   :  { %v825_v24 = vpop.permute.xlu0 %824 }
 0xcf4   :  { %v1915_v25 = vadd.f32 %v825_v24, %v817_v23 }
 0xcf6   :  { %1429 = vtanh.f32 %v1915_v25 }
 0xcfc   :  { %v1430_v26 = vpop.eup %1429 }
 0xcfd   :  { %830 = vrot.lane.b32.xlu2 %v1430_v26, %s1581_s16 }
 0xd56   :  { %v893_v27 = vpop.permute.xlu1 %892 }
 0xd57   :  { %v895_v32 = vmul.f32 %v893_v27, %v876_v14  ;;  %v831_v41 = vpop.permute.xlu2 %830 }
 0xd58   :  { %v1919_v31 = vmul.f32 %v831_v41, %v814_v17 }
 0xd59   :  { %897 = vrot.lane.b32.xlu0 %v895_v32, %s1582_s17 }
 0xd5a   :  { %901 = vrot.lane.b32.xlu1 %v1919_v31, %s1581_s16 }
 0xdcb   :  { %v898_v29 = vpop.permute.xlu0 %897 }
 0xdcc   :  { %1319 = vmatmul.msk.f32.vlgmr.msrb.gmra.mxu3 %vm182_vm5, %v898_v29  ;;  %v902_v48 = vpop.permute.xlu1 %901 }
 0xdcd   :  { %v904_v44 = vsel %vm182_vm5, %v898_v29, %v902_v48 }
 0xdce   :  { %1317 = vmatmul.msk.f32.vlgmr.msrb.gmra.mxu1 %vm249_vm6, %v904_v44 }
 0xe4b   :  { %v925_v49 = vpop.f32.mrf.mxu1 }
 0xe4c   :  { %v926_v47 = vadd.f32 %v1771_v50, %v925_v49 }
 0xe4e   :  { %1431 = vtanh.f32 %v926_v47  ;;  %v1318_v57 = vmul.f32 -1.442695, %v926_v47  ;;  %v1963_v47 = vld [vmem:[%s2024_s6] ss:$0 sm:$0xff] }
 0xe4f   :  { %v986_v40 = vpop.f32.mrf.mxu3 }
 0xe50   :  { %v989_v54 = vadd.f32 %v986_v40, %v157_v53 }
 0xe52   :  { %1433 = vtanh.f32 %v989_v54  ;;  %v1320_v0 = vmul.f32 -1.442695, %v989_v54 }
 0xe53   :  { %1435 = vpow2.f32 %v1318_v57 }
 0xe54   :  { %v1432_v55 = vpop.eup %1431 }
 0xe55   :  { %950 = vrot.lane.b32.xlu2 %v1432_v55, %s1581_s16 }
 0xe58   :  { %v1434_v56 = vpop.eup %1433 }
 0xe59   :  { %1012 = vrot.lane.b32.xlu0 %v1434_v56, %s1581_s16  ;;  %v1436_v50 = vpop.eup %1435 }
 0xe5a   :  { %v931_v33 = vadd.f32 1.0, %v1436_v50 }
 0xe5c   :  { %1437 = vrcp.f32 %v931_v33  ;;  %v943_v34 = vand.u32 2147483648, %v931_v33  ;;  %vm937_vm9 = vweird.f32 %v931_v33  ;;  %v941_v35 = vand.u32 2147483647, %v931_v33 }
 0xe5d   :  { %1439 = vpow2.f32 %v1320_v0 }
 0xe5e   :  { %v944_v38 = vor.u32 1.1754944e-38, %v943_v34  ;;  %vm942_vm11 = vcmp.eq.f32.partialorder %v941_v35, 8.507059e+37 }
 0xe62   :  { %v1438_v58 = vpop.eup %1437 }
 0xe63   :  { %v933_v59 = vmul.f32 %v1438_v58, %v931_v33  ;;  %v1440_v6 = vpop.eup %1439  ;;  %vm938_vm8 = vweird.f32 %v1438_v58 }
 0xe64   :  { %v993_v36 = vadd.f32 1.0, %v1440_v6  ;;  %vm939_vm10 = vmor %vm937_vm9, %vm938_vm8 }
 0xe65   :  { %v934_v2 = vsub.f32 1.0, %v933_v59 }
 0xe66   :  { %1441 = vrcp.f32 %v993_v36  ;;  %v1005_v4 = vand.u32 2147483648, %v993_v36  ;;  %vm999_vm13 = vweird.f32 %v993_v36  ;;  %v1003_v7 = vand.u32 2147483647, %v993_v36 }
 0xe67   :  { %v935_v5 = vmul.f32 %v1438_v58, %v934_v2 }
 0xe68   :  { %v1006_v10 = vor.u32 1.1754944e-38, %v1005_v4  ;;  %vm1004_vm15 = vcmp.eq.f32.partialorder %v1003_v7, 8.507059e+37 }
 0xe69   :  { %v936_v8 = vadd.f32 %v1438_v58, %v935_v5 }
 0xe6b   :  { %v940_v37 = vsel %vm939_vm10, %v1438_v58, %v936_v8 }
 0xe6c   :  { %v945_v42 = vsel %vm942_vm11, %v944_v38, %v940_v37  ;;  %v1442_v61 = vpop.eup %1441 }
 0xe6d   :  { %v995_v62 = vmul.f32 %v1442_v61, %v993_v36  ;;  %vm1000_vm12 = vweird.f32 %v1442_v61  ;;  %v948_v14 = vmul.f32 %v945_v42, %v1915_v25 }
 0xe6e   :  { %vm1001_vm14 = vmor %vm999_vm13, %vm1000_vm12 }
 0xe6f   :  { %v996_v63 = vsub.f32 1.0, %v995_v62 }
 0xe71   :  { %v997_v1 = vmul.f32 %v1442_v61, %v996_v63 }
 0xe73   :  { %v998_v3 = vadd.f32 %v1442_v61, %v997_v1 }
 0xe75   :  { %v1002_v9 = vsel %vm1001_vm14, %v1442_v61, %v998_v3 }
 0xe76   :  { %v1007_v12 = vsel %vm1004_vm15, %v1006_v10, %v1002_v9 }
 0xe77   :  { %v1010_v17 = vmul.f32 %v1007_v12, %v1910_v21  ;;  %v89_v21 = vld [vmem:[#allocation2 + $0x38] sm:$0xff] }
 0xe78   :  { %1295 = vmatmul.msk.f32.gmra.mxu0 %vm96_vm0, %v89_v21 }
 0xeaf   :  { %v951_v39 = vpop.permute.xlu2 %950 }
 0xeb0   :  { %v953_v60 = vmul.f32 %v951_v39, %v945_v42 }
 0xeb2   :  { %955 = vrot.lane.b32.xlu1 %v953_v60, %s1582_s17 }
 0xecb   :  { %v1013_v11 = vpop.permute.xlu0 %1012 }
 0xecc   :  { %v1015_v13 = vmul.f32 %v1013_v11, %v1007_v12 }
 0xece   :  { %1017 = vrot.lane.b32.xlu2 %v1015_v13, %s1582_s17 }
 0xef5   :  { %v159_v46 = vpop.f32.mrf.mxu0 }
 0xef6   :  { %v160_v29 = vadd.f32 %v1932_v51, %v159_v46 }
 0xf24   :  { %v956_v15 = vpop.permute.xlu1 %955 }
 0xf25   :  { %v1940_v16 = vadd.f32 %v956_v15, %v948_v14 }
 0xf27   :  { %1443 = vtanh.f32 %v1940_v16 }
 0xf28   :  { %v1018_v18 = vpop.permute.xlu2 %1017 }
 0xf29   :  { %v1944_v19 = vadd.f32 %v1018_v18, %v1010_v17 }
 0xf2b   :  { %1445 = vtanh.f32 %v1944_v19 }
 0xf2d   :  { %v1444_v20 = vpop.eup %1443 }
 0xf2e   :  { %961 = vrot.lane.b32.xlu0 %v1444_v20, %s1581_s16  ;;  %v1583_v20 = vmov 0  }
 0xf2f   :  { %1338 = vset.pattern.permute.xlu2 %v1583_v20  ;;  %1339 = vset.pattern.permute.xlu0 %v1583_v20 }
 0xf31   :  { %v1446_v22 = vpop.eup %1445 }
 0xf32   :  { %1023 = vrot.lane.b32.xlu1 %v1446_v22, %s1581_s16 }
 0xfa0   :  { %v962_v23 = vpop.permute.xlu0 %961 }
 0xfa1   :  { %v1949_v24 = vmul.f32 %v962_v23, %v945_v42 }
 0xfa3   :  { %1032 = vrot.lane.b32.xlu0 %v1949_v24, %s1581_s16 }
 0xfa4   :  { %v1024_v25 = vpop.permute.xlu1 %1023 }
 0xfa5   :  { %v1026_v26 = vmul.f32 %v1024_v25, %v1007_v12 }
 0xfa7   :  { %1028 = vrot.lane.b32.xlu2 %v1026_v26, %s1582_s17 }
0x1001   :  { %v1029_v27 = vpop.permute.xlu2 %1028 }
0x1002   :  { %1323 = vmatmul.msk.f32.vlgmr.msra.gmra.mxu3 %vm182_vm5, %v1029_v27 }
0x1015   :  { %v1033_v32 = vpop.permute.xlu0 %1032 }
0x1016   :  { %v1035_v41 = vsel %vm182_vm5, %v1029_v27, %v1033_v32 }
0x1017   :  { %1321 = vmatmul.msk.f32.vlgmr.msrb.gmra.mxu2 %vm249_vm6, %v1035_v41 }
0x1085   :  { %v1117_v48 = vpop.f32.mrf.mxu3 }
0x1086   :  { %v1120_v44 = vadd.f32 %v1117_v48, %v160_v29 }
0x1088   :  { %1447 = vtanh.f32 %v1120_v44  ;;  %v1324_v54 = vmul.f32 -1.442695, %v1120_v44 }
0x108e   :  { %v1448_v30 = vpop.eup %1447 }
0x108f   :  { %1143 = vrot.lane.b32.xlu2 %v1448_v30, %s1581_s16 }
0x109a   :  { %v1056_v49 = vpop.f32.mrf.mxu2 }
0x109b   :  { %v1057_v53 = vadd.f32 %v1963_v47, %v1056_v49 }
0x109d   :  { %1449 = vtanh.f32 %v1057_v53  ;;  %v1322_v6 = vmul.f32 -1.442695, %v1057_v53 }
0x109e   :  { %1451 = vpow2.f32 %v1324_v54 }
0x10a3   :  { %v1450_v40 = vpop.eup %1449 }
0x10a4   :  { %1081 = vrot.lane.b32.xlu1 %v1450_v40, %s1581_s16  ;;  %v1452_v51 = vpop.eup %1451 }
0x10a5   :  { %v1124_v55 = vadd.f32 1.0, %v1452_v51 }
0x10a7   :  { %1453 = vrcp.f32 %v1124_v55  ;;  %v1136_v59 = vand.u32 2147483648, %v1124_v55  ;;  %vm1130_vm1 = vweird.f32 %v1124_v55  ;;  %v1134_v0 = vand.u32 2147483647, %v1124_v55 }
0x10a8   :  { %1455 = vpow2.f32 %v1322_v6  ;;  %v1236_v6 = vld [vmem:[%s2025_s7 + $0x10] sm:$0xff] }
0x10a9   :  { %v1137_v5 = vor.u32 1.1754944e-38, %v1136_v59  ;;  %vm1135_vm3 = vcmp.eq.f32.partialorder %v1134_v0, 8.507059e+37 }
0x10ad   :  { %v1454_v56 = vpop.eup %1453 }
0x10ae   :  { %v1126_v57 = vmul.f32 %v1454_v56, %v1124_v55  ;;  %vm1131_vm0 = vweird.f32 %v1454_v56  ;;  %v1456_v36 = vpop.eup %1455 }
0x10af   :  { %vm1132_vm2 = vmor %vm1130_vm1, %vm1131_vm0  ;;  %v1062_v37 = vadd.f32 1.0, %v1456_v36 }
0x10b0   :  { %v1127_v50 = vsub.f32 1.0, %v1126_v57 }
0x10b1   :  { %1457 = vrcp.f32 %v1062_v37  ;;  %v1074_v62 = vand.u32 2147483648, %v1062_v37  ;;  %vm1068_vm7 = vweird.f32 %v1062_v37  ;;  %v1072_v63 = vand.u32 2147483647, %v1062_v37 }
0x10b2   :  { %v1128_v33 = vmul.f32 %v1454_v56, %v1127_v50 }
0x10b3   :  { %v1075_v3 = vor.u32 1.1754944e-38, %v1074_v62  ;;  %vm1073_vm9 = vcmp.eq.f32.partialorder %v1072_v63, 8.507059e+37 }
0x10b4   :  { %v1129_v58 = vadd.f32 %v1454_v56, %v1128_v33 }
0x10b6   :  { %v1133_v2 = vsel %vm1132_vm2, %v1454_v56, %v1129_v58 }
0x10b7   :  { %v1138_v34 = vsel %vm1135_vm3, %v1137_v5, %v1133_v2  ;;  %v1458_v38 = vpop.eup %1457  ;;  %v1237_v5 = vld [vmem:[%s2025_s7 + $0x18] sm:$0xff] }
0x10b8   :  { %v1064_v39 = vmul.f32 %v1458_v38, %v1062_v37  ;;  %vm1069_vm4 = vweird.f32 %v1458_v38  ;;  %v1141_v10 = vmul.f32 %v1138_v34, %v1944_v19  ;;  %1256 = vmatpush.msra.mxu1 %v1237_v5 }
0x10b9   :  { %vm1070_vm8 = vmor %vm1068_vm7, %vm1069_vm4  ;;  %vm1264_vm7 = vcmask 15360  }
0x10ba   :  { %v1065_v42 = vsub.f32 1.0, %v1064_v39  ;;  %1257 = vmatpush.msra.mxu1 %v1236_v6 }
0x10bc   :  { %v1066_v60 = vmul.f32 %v1458_v38, %v1065_v42 }
0x10be   :  { %v1067_v61 = vadd.f32 %v1458_v38, %v1066_v60 }
0x10c0   :  { %v1071_v1 = vsel %vm1070_vm8, %v1458_v38, %v1067_v61 }
0x10c1   :  { %v1076_v7 = vsel %vm1073_vm9, %v1075_v3, %v1071_v1 }
0x10c2   :  { %v1079_v14 = vmul.f32 %v1076_v7, %v1940_v16  ;;  %v178_v16 = vld [vmem:[%s2019_s1] sm:$0xff] }
0x10e9   :  { %v1144_v8 = vpop.permute.xlu2 %1143 }
0x10ea   :  { %v1146_v35 = vmul.f32 %v1144_v8, %v1138_v34  ;;  %v1235_v8 = vld [vmem:[%s2025_s7 + $0x8] sm:$0xff] }
0x10eb   :  { %1258 = vmatpush.msra.mxu1 %v1235_v8 }
0x10ec   :  { %1148 = vrot.lane.b32.xlu1 %v1146_v35, %s1582_s17 }
0x1116   :  { %v1082_v4 = vpop.permute.xlu1 %1081 }
0x1117   :  { %v1084_v9 = vmul.f32 %v1082_v4, %v1076_v7 }
0x1119   :  { %1086 = vrot.lane.b32.xlu0 %v1084_v9, %s1582_s17 }
0x115e   :  { %v1149_v11 = vpop.permute.xlu1 %1148 }
0x115f   :  { %v1151_v12 = vadd.f32 %v1149_v11, %v1141_v10 }
0x1161   :  { %1459 = vtanh.f32 %v1151_v12 }
0x1167   :  { %v1460_v13 = vpop.eup %1459 }
0x1168   :  { %1154 = vrot.lane.b32.xlu0 %v1460_v13, %s1581_s16 }
0x118b   :  { %v1087_v15 = vpop.permute.xlu0 %1086 }
0x118c   :  { %v1089_v17 = vadd.f32 %v1087_v15, %v1079_v14 }
0x118e   :  { %1461 = vtanh.f32 %v1089_v17 }
0x1194   :  { %v1462_v18 = vpop.eup %1461 }
0x1195   :  { %1092 = vrot.lane.b32.xlu2 %v1462_v18, %s1581_s16 }
0x11da   :  { %v1155_v22 = vpop.permute.xlu0 %1154 }
0x11db   :  { %v1157_v23 = vmul.f32 %v1155_v22, %v1138_v34  ;;  %v1234_v34 = vld [vmem:[%s2025_s7] sm:$0xff]  ;;  %s1584_s7 = smov [#allocation8]  }
0x11dc   :  { %1259 = vmatpush.msra.mxu1 %v1234_v34  ;;  %s1271_s29 = sshll.u32 %s1584_s7, 4  ;;  %s1272_s29 = int_to_ptr.vmem [resolvable:$true] %s1271_s29 }
0x11dd   :  { %1159 = vrot.lane.b32.xlu1 %v1157_v23, %s1582_s17 }
0x11ef   :  { %v1093_v19 = vpop.permute.xlu2 %1092 }
0x11f0   :  { %v1974_v25 = vmul.f32 %v1093_v19, %v1076_v7 }
0x11f2   :  { %1163 = vrot.lane.b32.xlu2 %v1974_v25, %s1581_s16 }
0x11fa   :  { %180 = vperm.xlu2 %1338, %v178_v16  }
0x124c   :  { %v1164_v26 = vpop.permute.xlu2 %1163 }
0x124f   :  { %v1160_v21 = vpop.permute.xlu1 %1159 }
0x1250   :  { %v1166_v27 = vsel %vm182_vm5, %v1160_v21, %v1164_v26 }
0x1251   :  { %1325 = vmatmul.msk.f32.vlgmr.msrb.gmra.mxu0 %vm249_vm6, %v1166_v27 }
0x1254   :  { %v181_v35 = vpop.permute.xlu2 %180 }
0x1255   :  { %vm310_vm13 = vcmp.eq.s32.totalorder %v181_v35, 1  ;;  %vm441_vm14 = vcmp.eq.s32.totalorder %v181_v35, 2  ;;  %vm572_vm15 = vcmp.eq.s32.totalorder %v181_v35, 3  ;;  %vm703_vm0 = vcmp.eq.s32.totalorder %v181_v35, 4 }
0x1256   :  { %v311_v36 = vsel %vm310_vm13, %v1788_v45, 0.0  ;;  %vm834_vm1 = vcmp.eq.s32.totalorder %v181_v35, 5  ;;  %vm965_vm2 = vcmp.eq.s32.totalorder %v181_v35, 6  ;;  %vm1096_vm3 = vcmp.eq.s32.totalorder %v181_v35, 7 }
0x1257   :  { %v442_v37 = vsel %vm441_vm14, %v1825_v52, %v311_v36  ;;  %vm1227_vm4 = vcmp.eq.s32.totalorder %v181_v35, 8 }
0x1258   :  { %v573_v38 = vsel %vm572_vm15, %v1862_v28, %v442_v37  ;;  %v1342_v28 = vld [vmem:[%s2026_s8] ss:$0 sm:$0xff] }
0x1259   :  { %v704_v39 = vsel %vm703_vm0, %v1891_v43, %v573_v38 }
0x125a   :  { %v835_v42 = vsel %vm834_vm1, %v1919_v31, %v704_v39 }
0x125b   :  { %v966_v60 = vsel %vm965_vm2, %v1949_v24, %v835_v42 }
0x125c   :  { %v1097_v45 = vsel %vm1096_vm3, %v1974_v25, %v966_v60 }
0x12ce   :  { %v1187_v32 = vpop.f32.mrf.mxu0 }
0x12cf   :  { %v1188_v41 = vadd.f32 %v1963_v47, %v1187_v32 }
0x12d1   :  { %1463 = vtanh.f32 %v1188_v41  ;;  %v1326_v29 = vmul.f32 -1.442695, %v1188_v41 }
0x12d3   :  { %1465 = vpow2.f32 %v1326_v29 }
0x12d7   :  { %v1464_v46 = vpop.eup %1463 }
0x12d8   :  { %1212 = vrot.lane.b32.xlu0 %v1464_v46, %s1581_s16 }
0x12d9   :  { %v1466_v48 = vpop.eup %1465 }
0x12da   :  { %v1193_v44 = vadd.f32 1.0, %v1466_v48 }
0x12dc   :  { %1467 = vrcp.f32 %v1193_v44  ;;  %v1205_v51 = vand.u32 2147483648, %v1193_v44  ;;  %vm1199_vm6 = vweird.f32 %v1193_v44  ;;  %v1203_v55 = vand.u32 2147483647, %v1193_v44 }
0x12de   :  { %v1206_v56 = vor.u32 1.1754944e-38, %v1205_v51  ;;  %vm1204_vm12 = vcmp.eq.f32.partialorder %v1203_v55, 8.507059e+37 }
0x12e2   :  { %v1468_v30 = vpop.eup %1467 }
0x12e3   :  { %v1195_v49 = vmul.f32 %v1468_v30, %v1193_v44  ;;  %vm1200_vm10 = vweird.f32 %v1468_v30 }
0x12e4   :  { %vm1201_vm11 = vmor %vm1199_vm6, %vm1200_vm10 }
0x12e5   :  { %v1196_v53 = vsub.f32 1.0, %v1195_v49 }
0x12e7   :  { %v1197_v40 = vmul.f32 %v1468_v30, %v1196_v53 }
0x12e9   :  { %v1198_v54 = vadd.f32 %v1468_v30, %v1197_v40 }
0x12eb   :  { %v1202_v47 = vsel %vm1201_vm11, %v1468_v30, %v1198_v54 }
0x12ec   :  { %v1207_v50 = vsel %vm1204_vm12, %v1206_v56, %v1202_v47 }
0x12ed   :  { %v1210_v58 = vmul.f32 %v1207_v50, %v1089_v17 }
0x134a   :  { %v1213_v57 = vpop.permute.xlu0 %1212 }
0x134b   :  { %v1215_v33 = vmul.f32 %v1213_v57, %v1207_v50 }
0x134d   :  { %1217 = vrot.lane.b32.xlu1 %v1215_v33, %s1582_s17 }
0x13bf   :  { %v1218_v59 = vpop.permute.xlu1 %1217 }
0x13c0   :  { %v1220_v0 = vadd.f32 %v1218_v59, %v1210_v58 }
0x13c2   :  { %1469 = vtanh.f32 %v1220_v0 }
0x13c8   :  { %v1470_v2 = vpop.eup %1469 }
0x13c9   :  { %1223 = vrot.lane.b32.xlu0 %v1470_v2, %s1581_s16 }
0x143b   :  { %v1224_v61 = vpop.permute.xlu0 %1223 }
0x143c   :  { %v1226_v62 = vmul.f32 %v1224_v61, %v1207_v50 }
0x143e   :  { %v1228_v63 = vsel %vm1227_vm4, %v1226_v62, %v1097_v45 }
0x143f   :  { %1230 = vrot.lane.b32.xlu1 %v1228_v63, %s1582_s17 }
0x14b1   :  { %v1231_v52 = vpop.permute.xlu1 %1230 }
0x14b2   :  { %1233 = vst.msk [vmem:[#allocation8] sm:$0xff] %vm182_vm5, %v1231_v52  ;;  %1327 = vmatmul.msk.f32.vlgmr.msra.gmra.mxu1 %vm182_vm5, %v1231_v52 }
0x14b3   :  { %1276 = dma.vmem_to_hbm [thread:$0]  %s1272_s29, 128, %s1274_s5, [#allocation4]  }
0x152f   :  { %v1261_v43 = vpop.f32.mrf.mxu1 }
0x1530   :  { %v1262_v31 = vadd.f32 %v1342_v28, %v1261_v43 }
0x1532   :  { %1265 = vst.msk [vmem:[%s2028_s10] sm:$0xff] %vm1264_vm7, %v1262_v31 }
0x1533   :  { %1573 = dma.done.wait [#allocation4], 128  }
0x1534   :  { %1574 = vsyncadd [#allocation4], 4294967168 }
0x1535   :  { %1285 = vsyncpa [#allocation3], 1 }
0x1536   :  { %1286 = vsyncpa [#allocation6], 1 }
0x1537   :  { %1287 = vsyncpa [#allocation4], 1 }

</bundles_post_ra>
